<compile_context>
chip_gen: v5e
topology: v5e:2x2
jax: 0.10.0
libtpu: 0.0.40
codegen_flags: <defaults>
</compile_context>

<pallas_src>
import math

import jax
import jax.numpy as jnp
from jax import lax
from jax.experimental import pallas as pl
from jax.experimental.pallas import tpu as pltpu

# ---------------- configuration (small, consistent with the module) ----------------
B = 2               # batch (raise to fill sublanes; all layout constants scale with it)
C = 6               # channel_size (mask_pos needs >= 6)
L = 16              # seq_length
L2 = L // 2         # rfft bins after dropping DC  (embedding in-features)
D = 32              # d_model
H = 4               # nhead
HD = D // H         # head dim
FF = 64             # dim_feedforward
NUM_LAYERS = 2
O = 5               # output_size
OPAD = 128          # lane-padded output width (sliced back to O in the wrapper)
BC = B * C          # flattened batch*channel rows
FILTER_POS = 1
LN_EPS = 1e-5
BN_EPS = 1e-5
NEG_INF = -1e30     # additive mask value (exp underflows to 0, same as -inf)
HIGHEST = lax.Precision.HIGHEST


def _round_up(x, m):
    return (x + m - 1) // m * m


OROWS = _round_up(max(B, 8), 8)            # padded output rows -> full (8,128) store

# ---- packed-slab layout constants ----
# basis slab (L + L2, D): rows 0:L = [cos | -sin] DFT basis, rows L:L+L2 = emb_w
BAS_ROWS = L + L2

# misc slab lane offsets
C_BN = 0                                   # per-row BN scale column (1 lane)
C_EMB = 8                                  # folded embedding bias  [C_EMB, C_EMB+D)
C_MASK = C_EMB + D                         # additive mask, heads stacked on sublanes
C_POOL = C_MASK + BC                       # per-sample mean-pool matrix
C_FC = _round_up(C_POOL + BC, 128)         # fc weight/bias (lane-padded to OPAD)
MISC_LANES = C_FC + OPAD
MISC_ROWS = max(H * BC, D + 1, OROWS)

# per-layer weight slab lane offsets
COL_QKV = 0
COL_WO = 3 * D
COL_W1 = 4 * D
COL_W2 = 4 * D + FF
ENC_W_LANES = _round_up(COL_W2 + D, 128)
ENC_W_ROWS = max(D, FF)

# per-layer vector slab rows (each vector starts at lane 0 -> no lane rotates)
R_BQKV, R_BO, R_LN1G, R_LN1B, R_B1, R_B2, R_LN2G, R_LN2B = range(8)
ENC_V_ROWS = 8


def _layernorm(x, g, b):
    mu = jnp.mean(x, axis=-1, keepdims=True)
    xc = x - mu
    var = jnp.mean(xc * xc, axis=-1, keepdims=True)
    return xc * lax.rsqrt(var + LN_EPS) * g + b


# ---------------------------------------------------------------------------------
# The single fused kernel: whole forward pass, no grid, everything VMEM resident.
# ---------------------------------------------------------------------------------
def fused_forward_kernel(x_ref, basis_ref, misc_ref, enc_w_ref, enc_v_ref, out_ref):
    # hoisted static slices out of the packed slabs (one-time, outside the layer loop)
    dft = basis_ref[0:L, 0:2 * L2]                         # (L, 2*L2)  cos | -sin
    emb_w = basis_ref[L:L + L2, 0:D]                       # (L2, D)
    bn_scale = misc_ref[0:BC, C_BN:C_BN + 1]               # (BC, 1)
    emb_bias = misc_ref[0:BC, C_EMB:C_EMB + D]             # (BC, D)  bn-folded emb bias
    mask4 = misc_ref[0:H * BC, C_MASK:C_MASK + BC]         # (H*BC, BC)
    pool = misc_ref[0:OROWS, C_POOL:C_POOL + BC]           # (OROWS, BC)
    fc_w = misc_ref[0:D, C_FC:C_FC + OPAD]                 # (D, OPAD)
    fc_b = misc_ref[D:D + 1, C_FC:C_FC + OPAD]             # (1, OPAD)

    # --- rfft amplitude (one HIGHEST-precision DFT matmul gives re & im) + cut-off ---
    reim = jnp.dot(x_ref[...], dft, precision=HIGHEST,
                   preferred_element_type=jnp.float32)     # (BC, 2*L2)
    re = reim[:, 0:L2]
    im = reim[:, L2:2 * L2]
    amp = jnp.sqrt(re * re + im * im)                      # |rfft(x)[1:]|

    mx = jnp.max(amp, axis=-1, keepdims=True)
    iota = lax.broadcasted_iota(jnp.int32, amp.shape, 1)
    idx = jnp.min(jnp.where(amp >= mx, iota, L2), axis=-1, keepdims=True)  # first argmax
    cutoff = idx + (FILTER_POS * (L2 - idx).astype(jnp.float32) / 4.0).astype(jnp.int32)
    amp = jnp.where(iota <= cutoff, amp, 0.0)

    # --- embedding + eval-mode BatchNorm1d (scale folded into amp rows) + relu ---
    h = jnp.dot(amp * bn_scale, emb_w, preferred_element_type=jnp.float32) + emb_bias
    h = jnp.maximum(h, 0.0)                                # (BC, D)

    # --- NUM_LAYERS transformer encoder layers (unrolled) ---
    for l in range(NUM_LAYERS):
        wqkv = enc_w_ref[l, 0:D, COL_QKV:COL_QKV + 3 * D]  # (D, 3D), scale folded in wq
        wo = enc_w_ref[l, 0:D, COL_WO:COL_WO + D]          # (D, D)
        w1 = enc_w_ref[l, 0:D, COL_W1:COL_W1 + FF]         # (D, FF)
        w2 = enc_w_ref[l, 0:FF, COL_W2:COL_W2 + D]         # (FF, D)
        bqkv = enc_v_ref[l, R_BQKV:R_BQKV + 1, 0:3 * D]
        bo = enc_v_ref[l, R_BO:R_BO + 1, 0:D]
        ln1g = enc_v_ref[l, R_LN1G:R_LN1G + 1, 0:D]
        ln1b = enc_v_ref[l, R_LN1B:R_LN1B + 1, 0:D]
        b1 = enc_v_ref[l, R_B1:R_B1 + 1, 0:FF]
        b2 = enc_v_ref[l, R_B2:R_B2 + 1, 0:D]
        ln2g = enc_v_ref[l, R_LN2G:R_LN2G + 1, 0:D]
        ln2b = enc_v_ref[l, R_LN2B:R_LN2B + 1, 0:D]

        # fused QKV projection: one MXU push instead of three
        qkv = jnp.dot(h, wqkv, preferred_element_type=jnp.float32) + bqkv   # (BC, 3D)

        # per-head scores stacked on the sublane axis -> one softmax for all heads
        s = jnp.concatenate(
            [lax.dot_general(qkv[:, hh * HD:(hh + 1) * HD],
                             qkv[:, D + hh * HD:D + (hh + 1) * HD],
                             (((1,), (1,)), ((), ())),
                             preferred_element_type=jnp.float32)
             for hh in range(H)], axis=0)                                   # (H*BC, BC)
        s = s + mask4                                                       # block-diag mask
        s = s - jnp.max(s, axis=-1, keepdims=True)
        p = jnp.exp(s)
        p = p * pl.reciprocal(jnp.sum(p, axis=-1, keepdims=True), approx=True)

        # head outputs concatenated on the lane axis -> single W_O matmul
        attn = jnp.concatenate(
            [jnp.dot(p[hh * BC:(hh + 1) * BC, :],
                     qkv[:, 2 * D + hh * HD:2 * D + (hh + 1) * HD],
                     preferred_element_type=jnp.float32)
             for hh in range(H)], axis=1)                                   # (BC, D)
        attn = jnp.dot(attn, wo, preferred_element_type=jnp.float32) + bo

        h = _layernorm(h + attn, ln1g, ln1b)

        ff = jnp.maximum(jnp.dot(h, w1, preferred_element_type=jnp.float32) + b1, 0.0)
        ff = jnp.dot(ff, w2, preferred_element_type=jnp.float32) + b2
        h = _layernorm(h + ff, ln2g, ln2b)

    # --- per-sample mean over channels (pool matmul, rows padded to 8) + final fc ---
    pooled = jnp.dot(pool, h, preferred_element_type=jnp.float32) * (1.0 / C)  # (OROWS, D)
    out_ref[...] = (jnp.dot(pooled, fc_w, preferred_element_type=jnp.float32) + fc_b)


def forward(x, kp):
    x_flat = x.reshape(BC, L)
    out_pad = pl.pallas_call(
        fused_forward_kernel,
        out_shape=jax.ShapeDtypeStruct((OROWS, OPAD), jnp.float32),
        in_specs=[pl.BlockSpec(memory_space=pltpu.MemorySpace.VMEM)] * 5,
        out_specs=pl.BlockSpec(memory_space=pltpu.MemorySpace.VMEM),
    )(x_flat, kp["basis"], kp["misc"], kp["enc_w"], kp["enc_v"])
    return out_pad[:B, :O]


# ---------------------------------------------------------------------------------
# Pure-JAX reference (operates in the original (B, C, ...) layout) for verification
# ---------------------------------------------------------------------------------
def reference_forward(x, p):
    re = jnp.einsum("bcl,lk->bck", x, p["dft_cos"], precision=HIGHEST)
    im = jnp.einsum("bcl,lk->bck", x, p["dft_sin"], precision=HIGHEST)
    amp = jnp.sqrt(re * re + im * im)
    mx = jnp.max(amp, axis=-1, keepdims=True)
    iota = jnp.arange(L2, dtype=jnp.int32)[None, None, :]
    idx = jnp.min(jnp.where(amp >= mx, iota, L2), axis=-1, keepdims=True)
    cutoff = idx + (FILTER_POS * (L2 - idx).astype(jnp.float32) / 4.0).astype(jnp.int32)
    amp = jnp.where(iota <= cutoff, amp, 0.0)
    h = jnp.einsum("bck,kd->bcd", amp, p["emb_w"]) + p["emb_b"]
    h = h * p["bn_scale"][None] + p["bn_shift"][None]
    h = jnp.maximum(h, 0.0)
    for lp in p["layers"]:
        q = jnp.einsum("bcd,de->bce", h, lp["wq"]) + lp["bq"]
        k = jnp.einsum("bcd,de->bce", h, lp["wk"]) + lp["bk"]
        v = jnp.einsum("bcd,de->bce", h, lp["wv"]) + lp["bv"]
        qh, kh, vh = (t.reshape(B, C, H, HD) for t in (q, k, v))
        s = jnp.einsum("bqhd,bkhd->bhqk", qh, kh) / math.sqrt(HD)
        s = s + p["mask_bias"][None, None]
        s = s - jnp.max(s, axis=-1, keepdims=True)
        pr = jnp.exp(s)
        pr = pr / jnp.sum(pr, axis=-1, keepdims=True)
        a = jnp.einsum("bhqk,bkhd->bqhd", pr, vh).reshape(B, C, D)
        a = jnp.einsum("bcd,de->bce", a, lp["wo"]) + lp["bo"]
        h = _layernorm(h + a, lp["ln1_g"], lp["ln1_b"])
        ff = jnp.maximum(jnp.einsum("bcd,df->bcf", h, lp["w1"]) + lp["b1"], 0.0)
        ff = jnp.einsum("bcf,fd->bcd", ff, lp["w2"]) + lp["b2"]
        h = _layernorm(h + ff, lp["ln2_g"], lp["ln2_b"])
    m = jnp.mean(h, axis=1)
    return m @ p["fc_w"] + p["fc_b"]


# ---------------------------------------------------------------------------------
# Deterministic parameter construction + one-time host-side packing into slabs
# ---------------------------------------------------------------------------------
def init_params(key):
    keys = iter(jax.random.split(key, 256))

    def nrm(shape, scale):
        return (scale * jax.random.normal(next(keys), shape)).astype(jnp.float32)

    # real-DFT basis for rfft bins 1..L/2 (DC dropped)
    n = jnp.arange(L, dtype=jnp.float32)[:, None]
    kk = jnp.arange(1, L2 + 1, dtype=jnp.float32)[None, :]
    ang = 2.0 * jnp.pi * n * kk / L
    dft_cos = jnp.cos(ang)                    # (L, L2)
    dft_sin = -jnp.sin(ang)                   # (L, L2)

    # eval-mode BatchNorm1d folded to per-channel scale/shift
    bn_gamma = 1.0 + nrm((C,), 0.1)
    bn_beta = nrm((C,), 0.1)
    bn_mean = nrm((C,), 0.1)
    bn_var = 1.0 + jnp.abs(nrm((C,), 0.1))
    bn_scale = (bn_gamma / jnp.sqrt(bn_var + BN_EPS)).reshape(C, 1)
    bn_shift = (bn_beta - bn_mean.reshape(-1) * bn_scale.reshape(-1)).reshape(C, 1)

    # src_mask from the module (True == masked) -> additive bias
    mask_pos = [[0, 4], [0, 5], [1, 3], [1, 5], [2, 3], [2, 4],
                [3, 1], [3, 2], [4, 0], [4, 2], [5, 0], [5, 1]]
    rows = jnp.array([m[0] for m in mask_pos])
    cols = jnp.array([m[1] for m in mask_pos])
    mask_bias = jnp.zeros((C, C), jnp.float32).at[rows, cols].set(NEG_INF)

    layers = []
    for _ in range(NUM_LAYERS):
        layers.append(dict(
            wq=nrm((D, D), 0.15), bq=nrm((1, D), 0.05),
            wk=nrm((D, D), 0.15), bk=nrm((1, D), 0.05),
            wv=nrm((D, D), 0.15), bv=nrm((1, D), 0.05),
            wo=nrm((D, D), 0.15), bo=nrm((1, D), 0.05),
            ln1_g=1.0 + nrm((1, D), 0.05), ln1_b=nrm((1, D), 0.05),
            w1=nrm((D, FF), 0.15), b1=nrm((1, FF), 0.05),
            w2=nrm((FF, D), 0.1), b2=nrm((1, D), 0.05),
            ln2_g=1.0 + nrm((1, D), 0.05), ln2_b=nrm((1, D), 0.05),
        ))

    return dict(
        dft_cos=dft_cos, dft_sin=dft_sin,
        emb_w=nrm((L2, D), 0.3), emb_b=nrm((1, D), 0.05),
        bn_scale=bn_scale, bn_shift=bn_shift,
        mask_bias=mask_bias,
        layers=layers,
        fc_w=nrm((D, O), 0.2), fc_b=nrm((1, O), 0.05),
    )


def pack_params(p):
    """Host-side, one-time packing of params into the 4 fused-kernel slabs."""
    f32 = jnp.float32

    # block-diagonal additive mask across the flattened batch, tiled across heads
    bidx = jnp.arange(BC, dtype=jnp.int32) // C
    same = bidx[:, None] == bidx[None, :]
    mask_full = jnp.where(same, jnp.tile(p["mask_bias"], (B, B)), NEG_INF)   # (BC, BC)
    mask4 = jnp.tile(mask_full, (H, 1))                                      # (H*BC, BC)

    # per-sample pooling matrix (1.0 entries; 1/C applied in-kernel in f32)
    pool = (jnp.arange(B, dtype=jnp.int32)[:, None] == bidx[None, :]).astype(f32)

    # eval-mode BN: scale kept per row, shift folded into the embedding bias
    bn_scale = jnp.tile(p["bn_scale"], (B, 1))                               # (BC, 1)
    bn_shift = jnp.tile(p["bn_shift"], (B, 1))                               # (BC, 1)
    emb_bias = bn_scale * p["emb_b"] + bn_shift                              # (BC, D)

    # basis slab: DFT cos|-sin on rows 0:L, embedding weight on rows L:L+L2
    basis = jnp.zeros((BAS_ROWS, D), f32)
    basis = basis.at[:L, :2 * L2].set(
        jnp.concatenate([p["dft_cos"], p["dft_sin"]], axis=1))
    basis = basis.at[L:, :D].set(p["emb_w"])

    # misc slab: BN scale / emb bias / mask / pool / fc (all static-offset slices)
    misc = jnp.zeros((MISC_ROWS, MISC_LANES), f32)
    misc = misc.at[:BC, C_BN:C_BN + 1].set(bn_scale)
    misc = misc.at[:BC, C_EMB:C_EMB + D].set(emb_bias)
    misc = misc.at[:H * BC, C_MASK:C_MASK + BC].set(mask4)
    misc = misc.at[:B, C_POOL:C_POOL + BC].set(pool)
    misc = misc.at[:D, C_FC:C_FC + O].set(p["fc_w"])          # lane-padded to OPAD
    misc = misc.at[D, C_FC:C_FC + O].set(p["fc_b"][0])

    # per-layer weight / vector slabs; fuse QKV and fold the attention scale into wq/bq
    scale = 1.0 / math.sqrt(HD)
    enc_w, enc_v = [], []
    for lp in p["layers"]:
        wqkv = jnp.concatenate([lp["wq"] * scale, lp["wk"], lp["wv"]], axis=1)  # (D, 3D)
        bqkv = jnp.concatenate([lp["bq"] * scale, lp["bk"], lp["bv"]], axis=1)  # (1, 3D)
        W = jnp.zeros((ENC_W_ROWS, ENC_W_LANES), f32)
        W = W.at[:D, COL_QKV:COL_QKV + 3 * D].set(wqkv)
        W = W.at[:D, COL_WO:COL_WO + D].set(lp["wo"])
        W = W.at[:D, COL_W1:COL_W1 + FF].set(lp["w1"])
        W = W.at[:FF, COL_W2:COL_W2 + D].set(lp["w2"])
        V = jnp.zeros((ENC_V_ROWS, 128), f32)
        V = V.at[R_BQKV, :3 * D].set(bqkv[0])
        V = V.at[R_BO, :D].set(lp["bo"][0])
        V = V.at[R_LN1G, :D].set(lp["ln1_g"][0])
        V = V.at[R_LN1B, :D].set(lp["ln1_b"][0])
        V = V.at[R_B1, :FF].set(lp["b1"][0])
        V = V.at[R_B2, :D].set(lp["b2"][0])
        V = V.at[R_LN2G, :D].set(lp["ln2_g"][0])
        V = V.at[R_LN2B, :D].set(lp["ln2_b"][0])
        enc_w.append(W)
        enc_v.append(V)

    return dict(basis=basis, misc=misc,
                enc_w=jnp.stack(enc_w), enc_v=jnp.stack(enc_v))


if __name__ == "__main__":
    root = jax.random.PRNGKey(0)
    k_params, k_x = jax.random.split(root)
    params = init_params(k_params)
    kparams = pack_params(params)
    x = jax.random.normal(k_x, (B, C, L), dtype=jnp.float32)

    out = jax.block_until_ready(forward(x, kparams))
    ref = jax.block_until_ready(reference_forward(x, params))

    assert out.shape == (B, O)
    assert bool(jnp.allclose(out, ref, atol=5e-2, rtol=5e-2)), (
        f"mismatch: max abs err {float(jnp.max(jnp.abs(out - ref)))}")

    print("KERNEL_OK")
</pallas_src>

<mosaic_0001>
module attributes {stable_mosaic.version = 11 : i64} {
  func.func @fused_forward_kernel(%arg0: memref<12x16xf32, #tpu.memory_space<vmem>>, %arg1: memref<24x32xf32, #tpu.memory_space<vmem>>, %arg2: memref<48x256xf32, #tpu.memory_space<vmem>>, %arg3: memref<2x64x256xf32, #tpu.memory_space<vmem>>, %arg4: memref<2x8x128xf32, #tpu.memory_space<vmem>>, %arg5: memref<8x128xf32, #tpu.memory_space<vmem>>) attributes {dimension_semantics = [], scalar_prefetch = 0 : i64, scratch_operands = 0 : i64, tpu.core_type = #tpu.core_type<tc>} {
    %c0 = arith.constant 0 : index
    %c0_0 = arith.constant 0 : index
    %0 = vector.load %arg1[%c0, %c0_0] : memref<24x32xf32, #tpu.memory_space<vmem>>, vector<16x16xf32>
    %c16 = arith.constant 16 : index
    %c0_1 = arith.constant 0 : index
    %1 = vector.load %arg1[%c16, %c0_1] : memref<24x32xf32, #tpu.memory_space<vmem>>, vector<8x32xf32>
    %c0_2 = arith.constant 0 : index
    %c0_3 = arith.constant 0 : index
    %2 = vector.load %arg2[%c0_2, %c0_3] : memref<48x256xf32, #tpu.memory_space<vmem>>, vector<12x1xf32>
    %c0_4 = arith.constant 0 : index
    %c8 = arith.constant 8 : index
    %3 = vector.load %arg2[%c0_4, %c8] : memref<48x256xf32, #tpu.memory_space<vmem>>, vector<12x32xf32>
    %c0_5 = arith.constant 0 : index
    %c40 = arith.constant 40 : index
    %4 = vector.load %arg2[%c0_5, %c40] : memref<48x256xf32, #tpu.memory_space<vmem>>, vector<48x12xf32>
    %c0_6 = arith.constant 0 : index
    %c52 = arith.constant 52 : index
    %5 = vector.load %arg2[%c0_6, %c52] : memref<48x256xf32, #tpu.memory_space<vmem>>, vector<8x12xf32>
    %c0_7 = arith.constant 0 : index
    %c128 = arith.constant 128 : index
    %6 = vector.load %arg2[%c0_7, %c128] : memref<48x256xf32, #tpu.memory_space<vmem>>, vector<32x128xf32>
    %c32 = arith.constant 32 : index
    %c128_8 = arith.constant 128 : index
    %7 = vector.load %arg2[%c32, %c128_8] : memref<48x256xf32, #tpu.memory_space<vmem>>, vector<1x128xf32>
    %c0_9 = arith.constant 0 : index
    %c0_10 = arith.constant 0 : index
    %8 = vector.load %arg0[%c0_9, %c0_10] : memref<12x16xf32, #tpu.memory_space<vmem>>, vector<12x16xf32>
    %cst = arith.constant dense<0.000000e+00> : vector<12x16xf32>
    %9 = tpu.matmul %8, %0, %cst {dimension_numbers = #tpu.dot_dimension_numbers<[1], [0], [0], [1], [0, 0, 1, 1], [], []>, precision = #tpu.contract_precision<fp32>} : vector<12x16xf32>, vector<16x16xf32>, vector<12x16xf32> -> vector<12x16xf32>
    %10 = vector.extract_strided_slice %9 {offsets = [0, 0], sizes = [12, 8], strides = [1, 1]} : vector<12x16xf32> to vector<12x8xf32>
    %11 = vector.extract_strided_slice %9 {offsets = [0, 8], sizes = [12, 8], strides = [1, 1]} : vector<12x16xf32> to vector<12x8xf32>
    %12 = arith.mulf %10, %10 : vector<12x8xf32>
    %13 = arith.mulf %11, %11 : vector<12x8xf32>
    %14 = arith.addf %12, %13 : vector<12x8xf32>
    %15 = math.sqrt %14 : vector<12x8xf32>
    %cst_11 = arith.constant dense<0xFF800000> : vector<12xf32>
    %16 = vector.multi_reduction <maximumf>, %15, %cst_11 [1] : vector<12x8xf32> to vector<12xf32>
    %17 = vector.shape_cast %16 : vector<12xf32> to vector<12x1xf32>
    %18 = tpu.iota {dimensions = array<i32: 1>} : vector<12x8xi32>
    %19 = vector.broadcast %17 : vector<12x1xf32> to vector<12x8xf32>
    %20 = arith.cmpf oge, %15, %19 : vector<12x8xf32>
    %c8_i32 = arith.constant 8 : i32
    %21 = vector.broadcast %c8_i32 : i32 to vector<12x8xi32>
    %22 = arith.select %20, %18, %21 : vector<12x8xi1>, vector<12x8xi32>
    %cst_12 = arith.constant dense<2147483647> : vector<12xi32>
    %23 = vector.multi_reduction <minsi>, %22, %cst_12 [1] : vector<12x8xi32> to vector<12xi32>
    %24 = vector.shape_cast %23 : vector<12xi32> to vector<12x1xi32>
    %c8_i32_13 = arith.constant 8 : i32
    %25 = vector.broadcast %c8_i32_13 : i32 to vector<12x1xi32>
    %26 = arith.subi %25, %24 : vector<12x1xi32>
    %27 = arith.sitofp %26 : vector<12x1xi32> to vector<12x1xf32>
    %cst_14 = arith.constant 1.000000e+00 : f32
    %28 = vector.broadcast %cst_14 : f32 to vector<12x1xf32>
    %29 = arith.mulf %28, %27 : vector<12x1xf32>
    %cst_15 = arith.constant 4.000000e+00 : f32
    %30 = vector.broadcast %cst_15 : f32 to vector<12x1xf32>
    %31 = arith.divf %29, %30 : vector<12x1xf32>
    %32 = arith.fptosi %31 : vector<12x1xf32> to vector<12x1xi32>
    %33 = arith.addi %24, %32 : vector<12x1xi32>
    %34 = vector.broadcast %33 : vector<12x1xi32> to vector<12x8xi32>
    %35 = arith.cmpi sle, %18, %34 : vector<12x8xi32>
    %cst_16 = arith.constant 0.000000e+00 : f32
    %36 = vector.broadcast %cst_16 : f32 to vector<12x8xf32>
    %37 = arith.select %35, %15, %36 : vector<12x8xi1>, vector<12x8xf32>
    %38 = vector.broadcast %2 : vector<12x1xf32> to vector<12x8xf32>
    %39 = arith.mulf %37, %38 : vector<12x8xf32>
    %cst_17 = arith.constant dense<0.000000e+00> : vector<12x32xf32>
    %40 = tpu.matmul %39, %1, %cst_17 {dimension_numbers = #tpu.dot_dimension_numbers<[1], [0], [0], [1], [0, 0, 1, 1], [], []>} : vector<12x8xf32>, vector<8x32xf32>, vector<12x32xf32> -> vector<12x32xf32>
    %41 = arith.addf %40, %3 : vector<12x32xf32>
    %cst_18 = arith.constant 0.000000e+00 : f32
    %42 = vector.broadcast %cst_18 : f32 to vector<12x32xf32>
    %43 = arith.maximumf %41, %42 : vector<12x32xf32>
    %c0_19 = arith.constant 0 : index
    %c0_20 = arith.constant 0 : index
    %c0_21 = arith.constant 0 : index
    %44 = vector.load %arg3[%c0_19, %c0_20, %c0_21] : memref<2x64x256xf32, #tpu.memory_space<vmem>>, vector<1x32x96xf32>
    %45 = vector.shape_cast %44 : vector<1x32x96xf32> to vector<32x96xf32>
    %c0_22 = arith.constant 0 : index
    %c0_23 = arith.constant 0 : index
    %c96 = arith.constant 96 : index
    %46 = vector.load %arg3[%c0_22, %c0_23, %c96] : memref<2x64x256xf32, #tpu.memory_space<vmem>>, vector<1x32x32xf32>
    %47 = vector.shape_cast %46 : vector<1x32x32xf32> to vector<32x32xf32>
    %c0_24 = arith.constant 0 : index
    %c0_25 = arith.constant 0 : index
    %c128_26 = arith.constant 128 : index
    %48 = vector.load %arg3[%c0_24, %c0_25, %c128_26] : memref<2x64x256xf32, #tpu.memory_space<vmem>>, vector<1x32x64xf32>
    %49 = vector.shape_cast %48 : vector<1x32x64xf32> to vector<32x64xf32>
    %c0_27 = arith.constant 0 : index
    %c0_28 = arith.constant 0 : index
    %c192 = arith.constant 192 : index
    %50 = vector.load %arg3[%c0_27, %c0_28, %c192] : memref<2x64x256xf32, #tpu.memory_space<vmem>>, vector<1x64x32xf32>
    %51 = vector.shape_cast %50 : vector<1x64x32xf32> to vector<64x32xf32>
    %c0_29 = arith.constant 0 : index
    %c0_30 = arith.constant 0 : index
    %c0_31 = arith.constant 0 : index
    %52 = vector.load %arg4[%c0_29, %c0_30, %c0_31] : memref<2x8x128xf32, #tpu.memory_space<vmem>>, vector<1x1x96xf32>
    %53 = vector.shape_cast %52 : vector<1x1x96xf32> to vector<1x96xf32>
    %c0_32 = arith.constant 0 : index
    %c1 = arith.constant 1 : index
    %c0_33 = arith.constant 0 : index
    %54 = vector.load %arg4[%c0_32, %c1, %c0_33] : memref<2x8x128xf32, #tpu.memory_space<vmem>>, vector<1x1x32xf32>
    %55 = vector.shape_cast %54 : vector<1x1x32xf32> to vector<1x32xf32>
    %c0_34 = arith.constant 0 : index
    %c2 = arith.constant 2 : index
    %c0_35 = arith.constant 0 : index
    %56 = vector.load %arg4[%c0_34, %c2, %c0_35] : memref<2x8x128xf32, #tpu.memory_space<vmem>>, vector<1x1x32xf32>
    %57 = vector.shape_cast %56 : vector<1x1x32xf32> to vector<1x32xf32>
    %c0_36 = arith.constant 0 : index
    %c3 = arith.constant 3 : index
    %c0_37 = arith.constant 0 : index
    %58 = vector.load %arg4[%c0_36, %c3, %c0_37] : memref<2x8x128xf32, #tpu.memory_space<vmem>>, vector<1x1x32xf32>
    %59 = vector.shape_cast %58 : vector<1x1x32xf32> to vector<1x32xf32>
    %c0_38 = arith.constant 0 : index
    %c4 = arith.constant 4 : index
    %c0_39 = arith.constant 0 : index
    %60 = vector.load %arg4[%c0_38, %c4, %c0_39] : memref<2x8x128xf32, #tpu.memory_space<vmem>>, vector<1x1x64xf32>
    %61 = vector.shape_cast %60 : vector<1x1x64xf32> to vector<1x64xf32>
    %c0_40 = arith.constant 0 : index
    %c5 = arith.constant 5 : index
    %c0_41 = arith.constant 0 : index
    %62 = vector.load %arg4[%c0_40, %c5, %c0_41] : memref<2x8x128xf32, #tpu.memory_space<vmem>>, vector<1x1x32xf32>
    %63 = vector.shape_cast %62 : vector<1x1x32xf32> to vector<1x32xf32>
    %c0_42 = arith.constant 0 : index
    %c6 = arith.constant 6 : index
    %c0_43 = arith.constant 0 : index
    %64 = vector.load %arg4[%c0_42, %c6, %c0_43] : memref<2x8x128xf32, #tpu.memory_space<vmem>>, vector<1x1x32xf32>
    %65 = vector.shape_cast %64 : vector<1x1x32xf32> to vector<1x32xf32>
    %c0_44 = arith.constant 0 : index
    %c7 = arith.constant 7 : index
    %c0_45 = arith.constant 0 : index
    %66 = vector.load %arg4[%c0_44, %c7, %c0_45] : memref<2x8x128xf32, #tpu.memory_space<vmem>>, vector<1x1x32xf32>
    %67 = vector.shape_cast %66 : vector<1x1x32xf32> to vector<1x32xf32>
    %cst_46 = arith.constant dense<0.000000e+00> : vector<12x96xf32>
    %68 = tpu.matmul %43, %45, %cst_46 {dimension_numbers = #tpu.dot_dimension_numbers<[1], [0], [0], [1], [0, 0, 1, 1], [], []>} : vector<12x32xf32>, vector<32x96xf32>, vector<12x96xf32> -> vector<12x96xf32>
    %69 = vector.broadcast %53 : vector<1x96xf32> to vector<12x96xf32>
    %70 = arith.addf %68, %69 : vector<12x96xf32>
    %71 = vector.extract_strided_slice %70 {offsets = [0, 0], sizes = [12, 8], strides = [1, 1]} : vector<12x96xf32> to vector<12x8xf32>
    %72 = vector.extract_strided_slice %70 {offsets = [0, 32], sizes = [12, 8], strides = [1, 1]} : vector<12x96xf32> to vector<12x8xf32>
    %cst_47 = arith.constant dense<0.000000e+00> : vector<12x12xf32>
    %73 = tpu.matmul %71, %72, %cst_47 {dimension_numbers = #tpu.dot_dimension_numbers<[1], [1], [0], [0], [0, 0, 1, 0], [], []>} : vector<12x8xf32>, vector<12x8xf32>, vector<12x12xf32> -> vector<12x12xf32>
    %74 = vector.extract_strided_slice %70 {offsets = [0, 8], sizes = [12, 8], strides = [1, 1]} : vector<12x96xf32> to vector<12x8xf32>
    %75 = vector.extract_strided_slice %70 {offsets = [0, 40], sizes = [12, 8], strides = [1, 1]} : vector<12x96xf32> to vector<12x8xf32>
    %cst_48 = arith.constant dense<0.000000e+00> : vector<12x12xf32>
    %76 = tpu.matmul %74, %75, %cst_48 {dimension_numbers = #tpu.dot_dimension_numbers<[1], [1], [0], [0], [0, 0, 1, 0], [], []>} : vector<12x8xf32>, vector<12x8xf32>, vector<12x12xf32> -> vector<12x12xf32>
    %77 = vector.extract_strided_slice %70 {offsets = [0, 16], sizes = [12, 8], strides = [1, 1]} : vector<12x96xf32> to vector<12x8xf32>
    %78 = vector.extract_strided_slice %70 {offsets = [0, 48], sizes = [12, 8], strides = [1, 1]} : vector<12x96xf32> to vector<12x8xf32>
    %cst_49 = arith.constant dense<0.000000e+00> : vector<12x12xf32>
    %79 = tpu.matmul %77, %78, %cst_49 {dimension_numbers = #tpu.dot_dimension_numbers<[1], [1], [0], [0], [0, 0, 1, 0], [], []>} : vector<12x8xf32>, vector<12x8xf32>, vector<12x12xf32> -> vector<12x12xf32>
    %80 = vector.extract_strided_slice %70 {offsets = [0, 24], sizes = [12, 8], strides = [1, 1]} : vector<12x96xf32> to vector<12x8xf32>
    %81 = vector.extract_strided_slice %70 {offsets = [0, 56], sizes = [12, 8], strides = [1, 1]} : vector<12x96xf32> to vector<12x8xf32>
    %cst_50 = arith.constant dense<0.000000e+00> : vector<12x12xf32>
    %82 = tpu.matmul %80, %81, %cst_50 {dimension_numbers = #tpu.dot_dimension_numbers<[1], [1], [0], [0], [0, 0, 1, 0], [], []>} : vector<12x8xf32>, vector<12x8xf32>, vector<12x12xf32> -> vector<12x12xf32>
    %83 = tpu.concatenate %73, %76, %79, %82 in 0 : vector<12x12xf32>, vector<12x12xf32>, vector<12x12xf32>, vector<12x12xf32> -> vector<48x12xf32>
    %84 = arith.addf %83, %4 : vector<48x12xf32>
    %cst_51 = arith.constant dense<0xFF800000> : vector<48xf32>
    %85 = vector.multi_reduction <maximumf>, %84, %cst_51 [1] : vector<48x12xf32> to vector<48xf32>
    %86 = vector.shape_cast %85 : vector<48xf32> to vector<48x1xf32>
    %87 = vector.broadcast %86 : vector<48x1xf32> to vector<48x12xf32>
    %88 = arith.subf %84, %87 : vector<48x12xf32>
    %89 = math.exp %88 : vector<48x12xf32>
    %cst_52 = arith.constant dense<0.000000e+00> : vector<48xf32>
    %90 = vector.multi_reduction <add>, %89, %cst_52 [1] : vector<48x12xf32> to vector<48xf32>
    %91 = vector.shape_cast %90 : vector<48xf32> to vector<48x1xf32>
    %92 = tpu.reciprocal %91 {approx = true} : vector<48x1xf32> -> vector<48x1xf32>
    %93 = vector.broadcast %92 : vector<48x1xf32> to vector<48x12xf32>
    %94 = arith.mulf %89, %93 : vector<48x12xf32>
    %95 = vector.extract_strided_slice %94 {offsets = [0, 0], sizes = [12, 12], strides = [1, 1]} : vector<48x12xf32> to vector<12x12xf32>
    %96 = vector.extract_strided_slice %70 {offsets = [0, 64], sizes = [12, 8], strides = [1, 1]} : vector<12x96xf32> to vector<12x8xf32>
    %cst_53 = arith.constant dense<0.000000e+00> : vector<12x8xf32>
    %97 = tpu.matmul %95, %96, %cst_53 {dimension_numbers = #tpu.dot_dimension_numbers<[1], [0], [0], [1], [0, 0, 1, 1], [], []>} : vector<12x12xf32>, vector<12x8xf32>, vector<12x8xf32> -> vector<12x8xf32>
    %98 = vector.extract_strided_slice %94 {offsets = [12, 0], sizes = [12, 12], strides = [1, 1]} : vector<48x12xf32> to vector<12x12xf32>
    %99 = vector.extract_strided_slice %70 {offsets = [0, 72], sizes = [12, 8], strides = [1, 1]} : vector<12x96xf32> to vector<12x8xf32>
    %cst_54 = arith.constant dense<0.000000e+00> : vector<12x8xf32>
    %100 = tpu.matmul %98, %99, %cst_54 {dimension_numbers = #tpu.dot_dimension_numbers<[1], [0], [0], [1], [0, 0, 1, 1], [], []>} : vector<12x12xf32>, vector<12x8xf32>, vector<12x8xf32> -> vector<12x8xf32>
    %101 = vector.extract_strided_slice %94 {offsets = [24, 0], sizes = [12, 12], strides = [1, 1]} : vector<48x12xf32> to vector<12x12xf32>
    %102 = vector.extract_strided_slice %70 {offsets = [0, 80], sizes = [12, 8], strides = [1, 1]} : vector<12x96xf32> to vector<12x8xf32>
    %cst_55 = arith.constant dense<0.000000e+00> : vector<12x8xf32>
    %103 = tpu.matmul %101, %102, %cst_55 {dimension_numbers = #tpu.dot_dimension_numbers<[1], [0], [0], [1], [0, 0, 1, 1], [], []>} : vector<12x12xf32>, vector<12x8xf32>, vector<12x8xf32> -> vector<12x8xf32>
    %104 = vector.extract_strided_slice %94 {offsets = [36, 0], sizes = [12, 12], strides = [1, 1]} : vector<48x12xf32> to vector<12x12xf32>
    %105 = vector.extract_strided_slice %70 {offsets = [0, 88], sizes = [12, 8], strides = [1, 1]} : vector<12x96xf32> to vector<12x8xf32>
    %cst_56 = arith.constant dense<0.000000e+00> : vector<12x8xf32>
    %106 = tpu.matmul %104, %105, %cst_56 {dimension_numbers = #tpu.dot_dimension_numbers<[1], [0], [0], [1], [0, 0, 1, 1], [], []>} : vector<12x12xf32>, vector<12x8xf32>, vector<12x8xf32> -> vector<12x8xf32>
    %107 = tpu.concatenate %97, %100, %103, %106 in 1 : vector<12x8xf32>, vector<12x8xf32>, vector<12x8xf32>, vector<12x8xf32> -> vector<12x32xf32>
    %cst_57 = arith.constant dense<0.000000e+00> : vector<12x32xf32>
    %108 = tpu.matmul %107, %47, %cst_57 {dimension_numbers = #tpu.dot_dimension_numbers<[1], [0], [0], [1], [0, 0, 1, 1], [], []>} : vector<12x32xf32>, vector<32x32xf32>, vector<12x32xf32> -> vector<12x32xf32>
    %109 = vector.broadcast %55 : vector<1x32xf32> to vector<12x32xf32>
    %110 = arith.addf %108, %109 : vector<12x32xf32>
    %111 = arith.addf %43, %110 : vector<12x32xf32>
    %cst_58 = arith.constant dense<0.000000e+00> : vector<12xf32>
    %112 = vector.multi_reduction <add>, %111, %cst_58 [1] : vector<12x32xf32> to vector<12xf32>
    %113 = vector.shape_cast %112 : vector<12xf32> to vector<12x1xf32>
    %cst_59 = arith.constant 3.200000e+01 : f32
    %114 = vector.broadcast %cst_59 : f32 to vector<12x1xf32>
    %115 = arith.divf %113, %114 : vector<12x1xf32>
    %116 = vector.broadcast %115 : vector<12x1xf32> to vector<12x32xf32>
    %117 = arith.subf %111, %116 : vector<12x32xf32>
    %118 = arith.mulf %117, %117 : vector<12x32xf32>
    %cst_60 = arith.constant dense<0.000000e+00> : vector<12xf32>
    %119 = vector.multi_reduction <add>, %118, %cst_60 [1] : vector<12x32xf32> to vector<12xf32>
    %120 = vector.shape_cast %119 : vector<12xf32> to vector<12x1xf32>
    %cst_61 = arith.constant 3.200000e+01 : f32
    %121 = vector.broadcast %cst_61 : f32 to vector<12x1xf32>
    %122 = arith.divf %120, %121 : vector<12x1xf32>
    %cst_62 = arith.constant 9.99999974E-6 : f32
    %123 = vector.broadcast %cst_62 : f32 to vector<12x1xf32>
    %124 = arith.addf %122, %123 : vector<12x1xf32>
    %125 = math.rsqrt %124 : vector<12x1xf32>
    %126 = vector.broadcast %125 : vector<12x1xf32> to vector<12x32xf32>
    %127 = arith.mulf %117, %126 : vector<12x32xf32>
    %128 = vector.broadcast %57 : vector<1x32xf32> to vector<12x32xf32>
    %129 = arith.mulf %127, %128 : vector<12x32xf32>
    %130 = vector.broadcast %59 : vector<1x32xf32> to vector<12x32xf32>
    %131 = arith.addf %129, %130 : vector<12x32xf32>
    %cst_63 = arith.constant dense<0.000000e+00> : vector<12x64xf32>
    %132 = tpu.matmul %131, %49, %cst_63 {dimension_numbers = #tpu.dot_dimension_numbers<[1], [0], [0], [1], [0, 0, 1, 1], [], []>} : vector<12x32xf32>, vector<32x64xf32>, vector<12x64xf32> -> vector<12x64xf32>
    %133 = vector.broadcast %61 : vector<1x64xf32> to vector<12x64xf32>
    %134 = arith.addf %132, %133 : vector<12x64xf32>
    %cst_64 = arith.constant 0.000000e+00 : f32
    %135 = vector.broadcast %cst_64 : f32 to vector<12x64xf32>
    %136 = arith.maximumf %134, %135 : vector<12x64xf32>
    %cst_65 = arith.constant dense<0.000000e+00> : vector<12x32xf32>
    %137 = tpu.matmul %136, %51, %cst_65 {dimension_numbers = #tpu.dot_dimension_numbers<[1], [0], [0], [1], [0, 0, 1, 1], [], []>} : vector<12x64xf32>, vector<64x32xf32>, vector<12x32xf32> -> vector<12x32xf32>
    %138 = vector.broadcast %63 : vector<1x32xf32> to vector<12x32xf32>
    %139 = arith.addf %137, %138 : vector<12x32xf32>
    %140 = arith.addf %131, %139 : vector<12x32xf32>
    %cst_66 = arith.constant dense<0.000000e+00> : vector<12xf32>
    %141 = vector.multi_reduction <add>, %140, %cst_66 [1] : vector<12x32xf32> to vector<12xf32>
    %142 = vector.shape_cast %141 : vector<12xf32> to vector<12x1xf32>
    %cst_67 = arith.constant 3.200000e+01 : f32
    %143 = vector.broadcast %cst_67 : f32 to vector<12x1xf32>
    %144 = arith.divf %142, %143 : vector<12x1xf32>
    %145 = vector.broadcast %144 : vector<12x1xf32> to vector<12x32xf32>
    %146 = arith.subf %140, %145 : vector<12x32xf32>
    %147 = arith.mulf %146, %146 : vector<12x32xf32>
    %cst_68 = arith.constant dense<0.000000e+00> : vector<12xf32>
    %148 = vector.multi_reduction <add>, %147, %cst_68 [1] : vector<12x32xf32> to vector<12xf32>
    %149 = vector.shape_cast %148 : vector<12xf32> to vector<12x1xf32>
    %cst_69 = arith.constant 3.200000e+01 : f32
    %150 = vector.broadcast %cst_69 : f32 to vector<12x1xf32>
    %151 = arith.divf %149, %150 : vector<12x1xf32>
    %cst_70 = arith.constant 9.99999974E-6 : f32
    %152 = vector.broadcast %cst_70 : f32 to vector<12x1xf32>
    %153 = arith.addf %151, %152 : vector<12x1xf32>
    %154 = math.rsqrt %153 : vector<12x1xf32>
    %155 = vector.broadcast %154 : vector<12x1xf32> to vector<12x32xf32>
    %156 = arith.mulf %146, %155 : vector<12x32xf32>
    %157 = vector.broadcast %65 : vector<1x32xf32> to vector<12x32xf32>
    %158 = arith.mulf %156, %157 : vector<12x32xf32>
    %159 = vector.broadcast %67 : vector<1x32xf32> to vector<12x32xf32>
    %160 = arith.addf %158, %159 : vector<12x32xf32>
    %c1_71 = arith.constant 1 : index
    %c0_72 = arith.constant 0 : index
    %c0_73 = arith.constant 0 : index
    %161 = vector.load %arg3[%c1_71, %c0_72, %c0_73] : memref<2x64x256xf32, #tpu.memory_space<vmem>>, vector<1x32x96xf32>
    %162 = vector.shape_cast %161 : vector<1x32x96xf32> to vector<32x96xf32>
    %c1_74 = arith.constant 1 : index
    %c0_75 = arith.constant 0 : index
    %c96_76 = arith.constant 96 : index
    %163 = vector.load %arg3[%c1_74, %c0_75, %c96_76] : memref<2x64x256xf32, #tpu.memory_space<vmem>>, vector<1x32x32xf32>
    %164 = vector.shape_cast %163 : vector<1x32x32xf32> to vector<32x32xf32>
    %c1_77 = arith.constant 1 : index
    %c0_78 = arith.constant 0 : index
    %c128_79 = arith.constant 128 : index
    %165 = vector.load %arg3[%c1_77, %c0_78, %c128_79] : memref<2x64x256xf32, #tpu.memory_space<vmem>>, vector<1x32x64xf32>
    %166 = vector.shape_cast %165 : vector<1x32x64xf32> to vector<32x64xf32>
    %c1_80 = arith.constant 1 : index
    %c0_81 = arith.constant 0 : index
    %c192_82 = arith.constant 192 : index
    %167 = vector.load %arg3[%c1_80, %c0_81, %c192_82] : memref<2x64x256xf32, #tpu.memory_space<vmem>>, vector<1x64x32xf32>
    %168 = vector.shape_cast %167 : vector<1x64x32xf32> to vector<64x32xf32>
    %c1_83 = arith.constant 1 : index
    %c0_84 = arith.constant 0 : index
    %c0_85 = arith.constant 0 : index
    %169 = vector.load %arg4[%c1_83, %c0_84, %c0_85] : memref<2x8x128xf32, #tpu.memory_space<vmem>>, vector<1x1x96xf32>
    %170 = vector.shape_cast %169 : vector<1x1x96xf32> to vector<1x96xf32>
    %c1_86 = arith.constant 1 : index
    %c1_87 = arith.constant 1 : index
    %c0_88 = arith.constant 0 : index
    %171 = vector.load %arg4[%c1_86, %c1_87, %c0_88] : memref<2x8x128xf32, #tpu.memory_space<vmem>>, vector<1x1x32xf32>
    %172 = vector.shape_cast %171 : vector<1x1x32xf32> to vector<1x32xf32>
    %c1_89 = arith.constant 1 : index
    %c2_90 = arith.constant 2 : index
    %c0_91 = arith.constant 0 : index
    %173 = vector.load %arg4[%c1_89, %c2_90, %c0_91] : memref<2x8x128xf32, #tpu.memory_space<vmem>>, vector<1x1x32xf32>
    %174 = vector.shape_cast %173 : vector<1x1x32xf32> to vector<1x32xf32>
    %c1_92 = arith.constant 1 : index
    %c3_93 = arith.constant 3 : index
    %c0_94 = arith.constant 0 : index
    %175 = vector.load %arg4[%c1_92, %c3_93, %c0_94] : memref<2x8x128xf32, #tpu.memory_space<vmem>>, vector<1x1x32xf32>
    %176 = vector.shape_cast %175 : vector<1x1x32xf32> to vector<1x32xf32>
    %c1_95 = arith.constant 1 : index
    %c4_96 = arith.constant 4 : index
    %c0_97 = arith.constant 0 : index
    %177 = vector.load %arg4[%c1_95, %c4_96, %c0_97] : memref<2x8x128xf32, #tpu.memory_space<vmem>>, vector<1x1x64xf32>
    %178 = vector.shape_cast %177 : vector<1x1x64xf32> to vector<1x64xf32>
    %c1_98 = arith.constant 1 : index
    %c5_99 = arith.constant 5 : index
    %c0_100 = arith.constant 0 : index
    %179 = vector.load %arg4[%c1_98, %c5_99, %c0_100] : memref<2x8x128xf32, #tpu.memory_space<vmem>>, vector<1x1x32xf32>
    %180 = vector.shape_cast %179 : vector<1x1x32xf32> to vector<1x32xf32>
    %c1_101 = arith.constant 1 : index
    %c6_102 = arith.constant 6 : index
    %c0_103 = arith.constant 0 : index
    %181 = vector.load %arg4[%c1_101, %c6_102, %c0_103] : memref<2x8x128xf32, #tpu.memory_space<vmem>>, vector<1x1x32xf32>
    %182 = vector.shape_cast %181 : vector<1x1x32xf32> to vector<1x32xf32>
    %c1_104 = arith.constant 1 : index
    %c7_105 = arith.constant 7 : index
    %c0_106 = arith.constant 0 : index
    %183 = vector.load %arg4[%c1_104, %c7_105, %c0_106] : memref<2x8x128xf32, #tpu.memory_space<vmem>>, vector<1x1x32xf32>
    %184 = vector.shape_cast %183 : vector<1x1x32xf32> to vector<1x32xf32>
    %cst_107 = arith.constant dense<0.000000e+00> : vector<12x96xf32>
    %185 = tpu.matmul %160, %162, %cst_107 {dimension_numbers = #tpu.dot_dimension_numbers<[1], [0], [0], [1], [0, 0, 1, 1], [], []>} : vector<12x32xf32>, vector<32x96xf32>, vector<12x96xf32> -> vector<12x96xf32>
    %186 = vector.broadcast %170 : vector<1x96xf32> to vector<12x96xf32>
    %187 = arith.addf %185, %186 : vector<12x96xf32>
    %188 = vector.extract_strided_slice %187 {offsets = [0, 0], sizes = [12, 8], strides = [1, 1]} : vector<12x96xf32> to vector<12x8xf32>
    %189 = vector.extract_strided_slice %187 {offsets = [0, 32], sizes = [12, 8], strides = [1, 1]} : vector<12x96xf32> to vector<12x8xf32>
    %cst_108 = arith.constant dense<0.000000e+00> : vector<12x12xf32>
    %190 = tpu.matmul %188, %189, %cst_108 {dimension_numbers = #tpu.dot_dimension_numbers<[1], [1], [0], [0], [0, 0, 1, 0], [], []>} : vector<12x8xf32>, vector<12x8xf32>, vector<12x12xf32> -> vector<12x12xf32>
    %191 = vector.extract_strided_slice %187 {offsets = [0, 8], sizes = [12, 8], strides = [1, 1]} : vector<12x96xf32> to vector<12x8xf32>
    %192 = vector.extract_strided_slice %187 {offsets = [0, 40], sizes = [12, 8], strides = [1, 1]} : vector<12x96xf32> to vector<12x8xf32>
    %cst_109 = arith.constant dense<0.000000e+00> : vector<12x12xf32>
    %193 = tpu.matmul %191, %192, %cst_109 {dimension_numbers = #tpu.dot_dimension_numbers<[1], [1], [0], [0], [0, 0, 1, 0], [], []>} : vector<12x8xf32>, vector<12x8xf32>, vector<12x12xf32> -> vector<12x12xf32>
    %194 = vector.extract_strided_slice %187 {offsets = [0, 16], sizes = [12, 8], strides = [1, 1]} : vector<12x96xf32> to vector<12x8xf32>
    %195 = vector.extract_strided_slice %187 {offsets = [0, 48], sizes = [12, 8], strides = [1, 1]} : vector<12x96xf32> to vector<12x8xf32>
    %cst_110 = arith.constant dense<0.000000e+00> : vector<12x12xf32>
    %196 = tpu.matmul %194, %195, %cst_110 {dimension_numbers = #tpu.dot_dimension_numbers<[1], [1], [0], [0], [0, 0, 1, 0], [], []>} : vector<12x8xf32>, vector<12x8xf32>, vector<12x12xf32> -> vector<12x12xf32>
    %197 = vector.extract_strided_slice %187 {offsets = [0, 24], sizes = [12, 8], strides = [1, 1]} : vector<12x96xf32> to vector<12x8xf32>
    %198 = vector.extract_strided_slice %187 {offsets = [0, 56], sizes = [12, 8], strides = [1, 1]} : vector<12x96xf32> to vector<12x8xf32>
    %cst_111 = arith.constant dense<0.000000e+00> : vector<12x12xf32>
    %199 = tpu.matmul %197, %198, %cst_111 {dimension_numbers = #tpu.dot_dimension_numbers<[1], [1], [0], [0], [0, 0, 1, 0], [], []>} : vector<12x8xf32>, vector<12x8xf32>, vector<12x12xf32> -> vector<12x12xf32>
    %200 = tpu.concatenate %190, %193, %196, %199 in 0 : vector<12x12xf32>, vector<12x12xf32>, vector<12x12xf32>, vector<12x12xf32> -> vector<48x12xf32>
    %201 = arith.addf %200, %4 : vector<48x12xf32>
    %cst_112 = arith.constant dense<0xFF800000> : vector<48xf32>
    %202 = vector.multi_reduction <maximumf>, %201, %cst_112 [1] : vector<48x12xf32> to vector<48xf32>
    %203 = vector.shape_cast %202 : vector<48xf32> to vector<48x1xf32>
    %204 = vector.broadcast %203 : vector<48x1xf32> to vector<48x12xf32>
    %205 = arith.subf %201, %204 : vector<48x12xf32>
    %206 = math.exp %205 : vector<48x12xf32>
    %cst_113 = arith.constant dense<0.000000e+00> : vector<48xf32>
    %207 = vector.multi_reduction <add>, %206, %cst_113 [1] : vector<48x12xf32> to vector<48xf32>
    %208 = vector.shape_cast %207 : vector<48xf32> to vector<48x1xf32>
    %209 = tpu.reciprocal %208 {approx = true} : vector<48x1xf32> -> vector<48x1xf32>
    %210 = vector.broadcast %209 : vector<48x1xf32> to vector<48x12xf32>
    %211 = arith.mulf %206, %210 : vector<48x12xf32>
    %212 = vector.extract_strided_slice %211 {offsets = [0, 0], sizes = [12, 12], strides = [1, 1]} : vector<48x12xf32> to vector<12x12xf32>
    %213 = vector.extract_strided_slice %187 {offsets = [0, 64], sizes = [12, 8], strides = [1, 1]} : vector<12x96xf32> to vector<12x8xf32>
    %cst_114 = arith.constant dense<0.000000e+00> : vector<12x8xf32>
    %214 = tpu.matmul %212, %213, %cst_114 {dimension_numbers = #tpu.dot_dimension_numbers<[1], [0], [0], [1], [0, 0, 1, 1], [], []>} : vector<12x12xf32>, vector<12x8xf32>, vector<12x8xf32> -> vector<12x8xf32>
    %215 = vector.extract_strided_slice %211 {offsets = [12, 0], sizes = [12, 12], strides = [1, 1]} : vector<48x12xf32> to vector<12x12xf32>
    %216 = vector.extract_strided_slice %187 {offsets = [0, 72], sizes = [12, 8], strides = [1, 1]} : vector<12x96xf32> to vector<12x8xf32>
    %cst_115 = arith.constant dense<0.000000e+00> : vector<12x8xf32>
    %217 = tpu.matmul %215, %216, %cst_115 {dimension_numbers = #tpu.dot_dimension_numbers<[1], [0], [0], [1], [0, 0, 1, 1], [], []>} : vector<12x12xf32>, vector<12x8xf32>, vector<12x8xf32> -> vector<12x8xf32>
    %218 = vector.extract_strided_slice %211 {offsets = [24, 0], sizes = [12, 12], strides = [1, 1]} : vector<48x12xf32> to vector<12x12xf32>
    %219 = vector.extract_strided_slice %187 {offsets = [0, 80], sizes = [12, 8], strides = [1, 1]} : vector<12x96xf32> to vector<12x8xf32>
    %cst_116 = arith.constant dense<0.000000e+00> : vector<12x8xf32>
    %220 = tpu.matmul %218, %219, %cst_116 {dimension_numbers = #tpu.dot_dimension_numbers<[1], [0], [0], [1], [0, 0, 1, 1], [], []>} : vector<12x12xf32>, vector<12x8xf32>, vector<12x8xf32> -> vector<12x8xf32>
    %221 = vector.extract_strided_slice %211 {offsets = [36, 0], sizes = [12, 12], strides = [1, 1]} : vector<48x12xf32> to vector<12x12xf32>
    %222 = vector.extract_strided_slice %187 {offsets = [0, 88], sizes = [12, 8], strides = [1, 1]} : vector<12x96xf32> to vector<12x8xf32>
    %cst_117 = arith.constant dense<0.000000e+00> : vector<12x8xf32>
    %223 = tpu.matmul %221, %222, %cst_117 {dimension_numbers = #tpu.dot_dimension_numbers<[1], [0], [0], [1], [0, 0, 1, 1], [], []>} : vector<12x12xf32>, vector<12x8xf32>, vector<12x8xf32> -> vector<12x8xf32>
    %224 = tpu.concatenate %214, %217, %220, %223 in 1 : vector<12x8xf32>, vector<12x8xf32>, vector<12x8xf32>, vector<12x8xf32> -> vector<12x32xf32>
    %cst_118 = arith.constant dense<0.000000e+00> : vector<12x32xf32>
    %225 = tpu.matmul %224, %164, %cst_118 {dimension_numbers = #tpu.dot_dimension_numbers<[1], [0], [0], [1], [0, 0, 1, 1], [], []>} : vector<12x32xf32>, vector<32x32xf32>, vector<12x32xf32> -> vector<12x32xf32>
    %226 = vector.broadcast %172 : vector<1x32xf32> to vector<12x32xf32>
    %227 = arith.addf %225, %226 : vector<12x32xf32>
    %228 = arith.addf %160, %227 : vector<12x32xf32>
    %cst_119 = arith.constant dense<0.000000e+00> : vector<12xf32>
    %229 = vector.multi_reduction <add>, %228, %cst_119 [1] : vector<12x32xf32> to vector<12xf32>
    %230 = vector.shape_cast %229 : vector<12xf32> to vector<12x1xf32>
    %cst_120 = arith.constant 3.200000e+01 : f32
    %231 = vector.broadcast %cst_120 : f32 to vector<12x1xf32>
    %232 = arith.divf %230, %231 : vector<12x1xf32>
    %233 = vector.broadcast %232 : vector<12x1xf32> to vector<12x32xf32>
    %234 = arith.subf %228, %233 : vector<12x32xf32>
    %235 = arith.mulf %234, %234 : vector<12x32xf32>
    %cst_121 = arith.constant dense<0.000000e+00> : vector<12xf32>
    %236 = vector.multi_reduction <add>, %235, %cst_121 [1] : vector<12x32xf32> to vector<12xf32>
    %237 = vector.shape_cast %236 : vector<12xf32> to vector<12x1xf32>
    %cst_122 = arith.constant 3.200000e+01 : f32
    %238 = vector.broadcast %cst_122 : f32 to vector<12x1xf32>
    %239 = arith.divf %237, %238 : vector<12x1xf32>
    %cst_123 = arith.constant 9.99999974E-6 : f32
    %240 = vector.broadcast %cst_123 : f32 to vector<12x1xf32>
    %241 = arith.addf %239, %240 : vector<12x1xf32>
    %242 = math.rsqrt %241 : vector<12x1xf32>
    %243 = vector.broadcast %242 : vector<12x1xf32> to vector<12x32xf32>
    %244 = arith.mulf %234, %243 : vector<12x32xf32>
    %245 = vector.broadcast %174 : vector<1x32xf32> to vector<12x32xf32>
    %246 = arith.mulf %244, %245 : vector<12x32xf32>
    %247 = vector.broadcast %176 : vector<1x32xf32> to vector<12x32xf32>
    %248 = arith.addf %246, %247 : vector<12x32xf32>
    %cst_124 = arith.constant dense<0.000000e+00> : vector<12x64xf32>
    %249 = tpu.matmul %248, %166, %cst_124 {dimension_numbers = #tpu.dot_dimension_numbers<[1], [0], [0], [1], [0, 0, 1, 1], [], []>} : vector<12x32xf32>, vector<32x64xf32>, vector<12x64xf32> -> vector<12x64xf32>
    %250 = vector.broadcast %178 : vector<1x64xf32> to vector<12x64xf32>
    %251 = arith.addf %249, %250 : vector<12x64xf32>
    %cst_125 = arith.constant 0.000000e+00 : f32
    %252 = vector.broadcast %cst_125 : f32 to vector<12x64xf32>
    %253 = arith.maximumf %251, %252 : vector<12x64xf32>
    %cst_126 = arith.constant dense<0.000000e+00> : vector<12x32xf32>
    %254 = tpu.matmul %253, %168, %cst_126 {dimension_numbers = #tpu.dot_dimension_numbers<[1], [0], [0], [1], [0, 0, 1, 1], [], []>} : vector<12x64xf32>, vector<64x32xf32>, vector<12x32xf32> -> vector<12x32xf32>
    %255 = vector.broadcast %180 : vector<1x32xf32> to vector<12x32xf32>
    %256 = arith.addf %254, %255 : vector<12x32xf32>
    %257 = arith.addf %248, %256 : vector<12x32xf32>
    %cst_127 = arith.constant dense<0.000000e+00> : vector<12xf32>
    %258 = vector.multi_reduction <add>, %257, %cst_127 [1] : vector<12x32xf32> to vector<12xf32>
    %259 = vector.shape_cast %258 : vector<12xf32> to vector<12x1xf32>
    %cst_128 = arith.constant 3.200000e+01 : f32
    %260 = vector.broadcast %cst_128 : f32 to vector<12x1xf32>
    %261 = arith.divf %259, %260 : vector<12x1xf32>
    %262 = vector.broadcast %261 : vector<12x1xf32> to vector<12x32xf32>
    %263 = arith.subf %257, %262 : vector<12x32xf32>
    %264 = arith.mulf %263, %263 : vector<12x32xf32>
    %cst_129 = arith.constant dense<0.000000e+00> : vector<12xf32>
    %265 = vector.multi_reduction <add>, %264, %cst_129 [1] : vector<12x32xf32> to vector<12xf32>
    %266 = vector.shape_cast %265 : vector<12xf32> to vector<12x1xf32>
    %cst_130 = arith.constant 3.200000e+01 : f32
    %267 = vector.broadcast %cst_130 : f32 to vector<12x1xf32>
    %268 = arith.divf %266, %267 : vector<12x1xf32>
    %cst_131 = arith.constant 9.99999974E-6 : f32
    %269 = vector.broadcast %cst_131 : f32 to vector<12x1xf32>
    %270 = arith.addf %268, %269 : vector<12x1xf32>
    %271 = math.rsqrt %270 : vector<12x1xf32>
    %272 = vector.broadcast %271 : vector<12x1xf32> to vector<12x32xf32>
    %273 = arith.mulf %263, %272 : vector<12x32xf32>
    %274 = vector.broadcast %182 : vector<1x32xf32> to vector<12x32xf32>
    %275 = arith.mulf %273, %274 : vector<12x32xf32>
    %276 = vector.broadcast %184 : vector<1x32xf32> to vector<12x32xf32>
    %277 = arith.addf %275, %276 : vector<12x32xf32>
    %cst_132 = arith.constant dense<0.000000e+00> : vector<8x32xf32>
    %278 = tpu.matmul %5, %277, %cst_132 {dimension_numbers = #tpu.dot_dimension_numbers<[1], [0], [0], [1], [0, 0, 1, 1], [], []>} : vector<8x12xf32>, vector<12x32xf32>, vector<8x32xf32> -> vector<8x32xf32>
    %cst_133 = arith.constant 0.166666672 : f32
    %279 = vector.broadcast %cst_133 : f32 to vector<8x32xf32>
    %280 = arith.mulf %278, %279 : vector<8x32xf32>
    %cst_134 = arith.constant dense<0.000000e+00> : vector<8x128xf32>
    %281 = tpu.matmul %280, %6, %cst_134 {dimension_numbers = #tpu.dot_dimension_numbers<[1], [0], [0], [1], [0, 0, 1, 1], [], []>} : vector<8x32xf32>, vector<32x128xf32>, vector<8x128xf32> -> vector<8x128xf32>
    %282 = vector.broadcast %7 : vector<1x128xf32> to vector<8x128xf32>
    %283 = arith.addf %281, %282 : vector<8x128xf32>
    %c0_135 = arith.constant 0 : index
    %c0_136 = arith.constant 0 : index
    %284 = vector.load %arg5[%c0_135, %c0_136] : memref<8x128xf32, #tpu.memory_space<vmem>>, vector<8x128xf32>
    tpu.vector_store %arg5[%c0_135, %c0_136], %283 {strides = array<i32>} : memref<8x128xf32, #tpu.memory_space<vmem>>, vector<8x128xf32>,
    return
  }
}

</mosaic_0001>

<bundles_post_ra>
// kernel: tpu_custom_call.1
= control target key start
LH: loop header
LB: loop body
LE: loop exit
PB: predicated region body
PF: predicated region fallthrough
CT: control target
= control target key end

     0   :  { %10 = vsyncpa [#allocation3], 0  ;;  %s2922_s0 = inlined_call_operand.hbm [shape: f32[12,16], index: 0, kind: input, shape index: {}]   ;;  %s2923_s1 = inlined_call_operand.hbm [shape: f32[24,32], index: 1, kind: input, shape index: {}]   ;;  %s2924_s2 = inlined_call_operand.hbm [shape: f32[48,256], index: 2, kind: input, shape index: {}]   ;;  %s2925_s3 = inlined_call_operand.hbm [shape: f32[2,64,256], index: 3, kind: input, shape index: {}]   ;;  %s2926_s4 = inlined_call_operand.hbm [shape: f32[2,8,128], index: 4, kind: input, shape index: {}]   ;;  %s2927_s5 = inlined_call_operand.hbm [shape: f32[8,128], index: 5, kind: output, shape index: {}]  }
   0x1   :  { %11 = vsyncpa [#allocation6], 0 }
   0x2   :  { %12 = vsyncpa [#allocation9], 0 }
   0x3   :  { %13 = vsyncpa [#allocation4], 0  ;;  %s31_s20 = sshll.u32 %s2923_s1, 4  ;;  %s2418_s21 = smov [#allocation5]   ;;  %s32_s20 = int_to_ptr.hbm [resolvable:$true] %s31_s20 }
   0x4   :  { %s33_s22 = sshll.u32 %s2418_s21, 4  ;;  %s2419_s23 = smov 128   ;;  %s34_s22 = int_to_ptr.vmem [resolvable:$true] %s33_s22 }
   0x5   :  { %s2420_s24 = smov 8   ;;  %s57_s27 = sshll.u32 %s2925_s3, 4  ;;  %s58_s27 = int_to_ptr.hbm [resolvable:$true] %s57_s27 }
   0x6   :  { %39 = dma.hbm_to_vmem [thread:$0]  %s32_s20, 384, %s34_s22, [#allocation6], %s2419_s23, %s2419_s23, %s2420_s24  }
   0x7   :  { %s2421_s28 = smov [#allocation8]   ;;  %s18_s1 = sshll.u32 %s2922_s0, 4  ;;  %s19_s1 = int_to_ptr.hbm [resolvable:$true] %s18_s1 }
   0x8   :  { %s59_s29 = sshll.u32 %s2421_s28, 4  ;;  %s2422_s7 = smov 256   ;;  %s60_s29 = int_to_ptr.vmem [resolvable:$true] %s59_s29 }
   0x9   :  { %s2423_s8 = smov 16   ;;  %s44_s11 = sshll.u32 %s2924_s2, 4  ;;  %s45_s11 = int_to_ptr.hbm [resolvable:$true] %s44_s11 }
   0xa   :  { %65 = dma.hbm_to_vmem [thread:$0]  %s58_s27, 4096, %s60_s29, [#allocation9], %s2422_s7, %s2422_s7, %s2423_s8  }
   0xb   :  { %s2424_s12 = smov [#allocation2]   ;;  %s2425_s3 = smov [#allocation7]  }
   0xc   :  { %s20_s13 = sshll.u32 %s2424_s12, 4  ;;  %s46_s0 = sshll.u32 %s2425_s3, 4  ;;  %s21_s13 = int_to_ptr.vmem [resolvable:$true] %s20_s13  ;;  %s47_s0 = int_to_ptr.vmem [resolvable:$true] %s46_s0 }
   0xd   :  { %26 = dma.hbm_to_vmem [thread:$0]  %s19_s1, 256, %s21_s13, [#allocation3], %s2419_s23, %s2419_s23, %s2420_s24  }
   0xe   :  { %s70_s16 = sshll.u32 %s2926_s4, 4  ;;  %s2426_s17 = smov [#allocation10]   ;;  %s71_s16 = int_to_ptr.hbm [resolvable:$true] %s70_s16 }
   0xf   :  { %52 = dma.hbm_to_vmem [thread:$0]  %s45_s11, 1536, %s47_s0, [#allocation6], %s2422_s7, %s2422_s7, %s2423_s8  }
  0x10   :  { %s72_s2 = sshll.u32 %s2426_s17, 4  ;;  %s73_s2 = int_to_ptr.vmem [resolvable:$true] %s72_s2 }
  0x11   :  { %78 = dma.hbm_to_vmem [thread:$0]  %s71_s16, 256, %s73_s2, [#allocation9], %s2419_s23, %s2419_s23, %s2420_s24  }
  0x12   :  { %2410 = dma.done.wait [#allocation3], 256  }
  0x13   :  { %2411 = vsyncadd [#allocation3], 4294967040 }
  0x14   :  { %2412 = dma.done.wait [#allocation6], 1920  }
  0x15   :  { %2413 = vsyncadd [#allocation6], 4294965376 }
  0x16   :  { %2414 = dma.done.wait [#allocation9], 4352  }
  0x17   :  { %2415 = vsyncadd [#allocation9], 4294962944  ;;  %vm116_vm0 = vcmask 130048   ;;  %v100_v0 = vld [vmem:[#allocation5 + $0x8] sm:$0xff]  ;;  %v99_v1 = vld [vmem:[#allocation5] sm:$0xff]  ;;  %s2427_s4 = smov 120  }
  0x18   :  { %v114_v2 = vld [vmem:[#allocation2] sm:$0xff]  ;;  %v137_v3 = vand.u32 4294901760, %v100_v0  ;;  %v139_v4 = vand.u32 4294901760, %v99_v1  ;;  %v115_v6 = vld [vmem:[#allocation2 + $0x8] sm:$0xf]  ;;  %vm349_vm2 = vcmask 64512  }
  0x19   :  { %v118_v5 = vsel %vm116_vm0, %v114_v2, 0  ;;  %v121_v8 = vsel %vm116_vm0, %v115_v6, 0  ;;  %vm353_vm5 = vcmask 60416   ;;  %s2430_s18 = smov 104   ;;  %s2431_s19 = smov 80  }
  0x1a   :  { %v141_v7 = vand.u32 4294901760, %v118_v5  ;;  %v173_v9 = vsub.f32 %v100_v0, %v137_v3  ;;  %138 = vmatpush.msra.mxu0 %v137_v3  ;;  %v179_v10 = vsub.f32 %v99_v1, %v139_v4  ;;  %239 = vmatpush.msra.mxu3 %v137_v3  ;;  %v149_v11 = vand.u32 4294901760, %v121_v8  ;;  %s2432_s20 = smov 72   ;;  %s2433_s21 = smov 88  }
  0x1b   :  { %s2434_s22 = smov 112   ;;  %s2435_s23 = smov 96  }
  0x1c   :  { %v142_v12 = vsub.f32 %v118_v5, %v141_v7  ;;  %209 = vmatpush.msra.mxu2 %v173_v9  ;;  %140 = vmatpush.msra.mxu0 %v139_v4  ;;  %v174_v13 = vand.u32 4294901760, %v173_v9  ;;  %v180_v14 = vand.u32 4294901760, %v179_v10  ;;  %v150_v15 = vsub.f32 %v121_v8, %v149_v11  ;;  %s2436_s25 = smov 48   ;;  %s2437_s26 = smov 40  }
  0x1d   :  { %241 = vmatpush.msra.mxu3 %v139_v4  ;;  %s2438_s27 = smov 56   ;;  %s2439_s28 = smov 64  }
  0x1e   :  { %v143_v16 = vand.u32 4294901760, %v142_v12  ;;  %212 = vmatpush.msra.mxu2 %v179_v10  ;;  %v175_v17 = vsub.f32 %v173_v9, %v174_v13  ;;  %v181_v18 = vsub.f32 %v179_v10, %v180_v14  ;;  %v151_v19 = vand.u32 4294901760, %v150_v15  ;;  %272 = vmatpush.msrb.mxu0 %v174_v13  ;;  %s2440_s29 = smov 32   ;;  %s2441_s30 = smov 24  }
  0x1f   :  { %215 = vmatmul.f32.vlgmr.msra.gmra.mxu2 %v142_v12  ;;  %s2444_s6 = smov [#allocation11]   ;;  %s1988_s9 = sshll.u32 %s2927_s5, 4  ;;  %s1989_s9 = int_to_ptr.hbm [resolvable:$true] %s1988_s9 }
  0x20   :  { %v144_v20 = vsub.f32 %v142_v12, %v143_v16  ;;  %245 = vmatmul.f32.vlgmr.msra.gmra.mxu3 %v143_v16  ;;  %v176_v21 = vand.u32 4294901760, %v175_v17  ;;  %v182_v22 = vand.u32 4294901760, %v181_v18  ;;  %276 = vmatpush.msrb.mxu0 %v180_v14  ;;  %v152_v24 = vsub.f32 %v150_v15, %v151_v19  ;;  %s1986_s1 = sshll.u32 %s2444_s6, 4  ;;  %s1987_s1 = int_to_ptr.vmem [resolvable:$true] %s1986_s1 }
  0x21   :  { %v357_v12 = vlaneseq }
  0x22   :  { %v145_v23 = vand.u32 4294901760, %v144_v20  ;;  %177 = vmatpush.msra.mxu1 %v176_v21  ;;  %v153_v25 = vand.u32 4294901760, %v152_v24  ;;  %v2428_v24 = vmov 0  }
  0x23   :  { %v2513_v13 = vand.u32 127, %v357_v12  ;;  %2115 = vset.pattern.permute.xlu1 %v2428_v24  ;;  %2114 = vset.pattern.permute.xlu2 %v2428_v24 }
  0x24   :  { %146 = vmatmul.f32.vlgmr.msra.gmra.mxu0 %v145_v23  ;;  %183 = vmatpush.msra.mxu1 %v182_v22 }
  0x25   :  { %185 = vmatmul.f32.vlgmr.msra.gmra.mxu1 %v141_v7  ;;  %2176 = vset.pattern.permute.xlu0 %v2428_v24 }
  0x26   :  { %301 = vmatpush.msrb.mxu1 %v137_v3 }
  0x27   :  { %220 = vmatmul.f32.gmra.mxu2 %v150_v15 }
  0x28   :  { %251 = vmatmul.f32.gmra.mxu3 %v151_v19  ;;  %303 = vmatpush.msrb.mxu1 %v139_v4 }
  0x2c   :  { %154 = vmatmul.f32.gmra.mxu0 %v153_v25 }
  0x2d   :  { %189 = vmatmul.f32.gmra.mxu1 %v149_v11 }
  0x34   :  { %278 = vmatmul.f32.vlgmr.msrb.gmra.mxu0 %v141_v7 }
  0x35   :  { %305 = vmatmul.f32.vlgmr.msrb.gmra.mxu1 %v141_v7 }
  0x3c   :  { %282 = vmatmul.f32.gmra.mxu0 %v149_v11 }
  0x3d   :  { %309 = vmatmul.f32.gmra.mxu1 %v149_v11 }
  0xa1   :  { %v147_v26 = vpop.f32.mrf.mxu0 }
  0xa2   :  { %v186_v27 = vpop.f32.mrf.mxu1  ;;  %v216_v28 = vpop.f32.mrf.mxu2 }
  0xa3   :  { %v187_v29 = vadd.f32 %v186_v27, %v147_v26  ;;  %v246_v31 = vpop.f32.mrf.mxu3 }
  0xa5   :  { %v217_v33 = vadd.f32 %v216_v28, %v187_v29 }
  0xa7   :  { %v247_v34 = vadd.f32 %v246_v31, %v217_v33 }
  0xa9   :  { %v155_v30 = vpop.f32.mrf.mxu0 }
  0xaa   :  { %v190_v32 = vpop.f32.mrf.mxu1  ;;  %v221_v36 = vpop.f32.mrf.mxu2 }
  0xab   :  { %v191_v35 = vadd.f32 %v190_v32, %v155_v30  ;;  %v252_v42 = vpop.f32.mrf.mxu3  ;;  %v2521_v30 = vld [vmem:[#allocation7] sm:$0xff] }
  0xad   :  { %v222_v40 = vadd.f32 %v221_v36, %v191_v35  ;;  %v2429_v35 = vmov 4.0   ;;  %v101_v36 = vld [vmem:[#allocation5 + $0x10] sm:$0xff] }
  0xae   :  { %453 = vmatpush.msrb.mxu2 %v101_v36 }
  0xaf   :  { %v253_v44 = vadd.f32 %v252_v42, %v222_v40 }
  0xb1   :  { %v279_v37 = vpop.f32.mrf.mxu0 }
  0xb2   :  { %v280_v38 = vadd.f32 %v279_v37, %v247_v34  ;;  %v306_v39 = vpop.f32.mrf.mxu1  ;;  %v103_v34 = vld [vmem:[#allocation7 + $0x10] sm:$0xf] }
  0xb4   :  { %v307_v41 = vadd.f32 %v306_v39, %v280_v38 }
  0xb6   :  { %v313_v43 = vmul.f32 %v307_v41, %v307_v41 }
  0xb8   :  { %317 = vrot.lane.b32.xlu0 %v313_v43, %s2427_s4 }
  0xb9   :  { %v283_v45 = vpop.f32.mrf.mxu0 }
  0xba   :  { %v284_v46 = vadd.f32 %v283_v45, %v253_v44  ;;  %v310_v47 = vpop.f32.mrf.mxu1 }
  0xbc   :  { %v311_v48 = vadd.f32 %v310_v47, %v284_v46  ;;  %v2527_v47 = vld [vmem:[#allocation8 + $0x30] sm:$0xff] }
  0xbd   :  { %503 = vmatpush.msrb.mxu3 %v2527_v47 }
  0xbe   :  { %v314_v49 = vmul.f32 %v311_v48, %v311_v48  ;;  %v2529_v48 = vld [vmem:[#allocation8 + $0x20] sm:$0xff] }
  0xbf   :  { %504 = vmatpush.msrb.mxu3 %v2529_v48 }
  0xc0   :  { %319 = vrot.lane.b32.xlu0 %v314_v49, %s2427_s4 }
 0x12a   :  { %v318_v50 = vpop.permute.xlu0 %317 }
 0x12b   :  { %v323_v51 = vadd.f32 %v318_v50, %v313_v43 }
 0x12d   :  { %2193 = vrsqrt.f32 %v323_v51  ;;  %vm332_vm1 = vcmp.eq.f32.partialorder %v323_v51, inf  ;;  %v335_v0 = vand.u32 2147483648, %v323_v51  ;;  %vm334_vm3 = vcmp.eq.f32.partialorder %v323_v51, 0.0 }
 0x132   :  { %v320_v52 = vpop.permute.xlu0 %319 }
 0x133   :  { %v2194_v53 = vpop.eup %2193  ;;  %v324_v54 = vadd.f32 %v320_v52, %v314_v49  ;;  %v2116_v49 = vpack.i.bf16 %v2529_v48, %v2527_v47 }
 0x134   :  { %v326_v55 = vmul.f32 %v2194_v53, %v323_v51 }
 0x135   :  { %2195 = vrsqrt.f32 %v324_v54  ;;  %vm344_vm4 = vcmp.eq.f32.partialorder %v324_v54, inf  ;;  %v347_v8 = vand.u32 2147483648, %v324_v54  ;;  %vm346_vm6 = vcmp.eq.f32.partialorder %v324_v54, 0.0 }
 0x136   :  { %v327_v56 = vmul.f32 %v2194_v53, %v326_v55  ;;  %2197 = vrcp.f32 %v2429_v35 }
 0x138   :  { %v328_v57 = vmul.f32 0.5, %v327_v56 }
 0x13a   :  { %v329_v58 = vsub.f32 1.5, %v328_v57 }
 0x13b   :  { %v2196_v59 = vpop.eup %2195 }
 0x13c   :  { %v330_v60 = vmul.f32 %v2194_v53, %v329_v58  ;;  %v338_v61 = vmul.f32 %v2196_v59, %v324_v54  ;;  %v2198_v37 = vpop.eup %2197 }
 0x13d   :  { %v398_v38 = vmul.f32 4.0, %v2198_v37  ;;  %vm402_vm11 = vweird.f32 %v2198_v37 }
 0x13e   :  { %v331_v62 = vmul.f32 %v330_v60, %v323_v51  ;;  %v339_v63 = vmul.f32 %v2196_v59, %v338_v61 }
 0x13f   :  { %v399_v39 = vsub.f32 1.0, %v398_v38 }
 0x140   :  { %v333_v1 = vsel %vm332_vm1, %v323_v51, %v331_v62  ;;  %v340_v2 = vmul.f32 0.5, %v339_v63  ;;  %vm484_vm1 = vcmask 261120  }
 0x141   :  { %v2505_v3 = vsel %vm334_vm3, %v335_v0, %v333_v1  ;;  %v400_v41 = vmul.f32 %v2198_v37, %v399_v39  ;;  %vm714_vm3 = vcmask 97280  }
 0x142   :  { %v350_v4 = vsel %vm349_vm2, %v2505_v3, -inf  ;;  %v341_v5 = vsub.f32 1.5, %v340_v2 }
 0x143   :  { %351 = vmax.xlane.f32.xlu1 %v350_v4  ;;  %v401_v45 = vadd.f32 %v2198_v37, %v400_v41  ;;  %v108_v41 = vld [vmem:[#allocation7 + $0x50] sm:$0xff] }
 0x144   :  { %v342_v6 = vmul.f32 %v2196_v59, %v341_v5 }
 0x145   :  { %v403_v52 = vsel %vm402_vm11, %v2198_v37, %v401_v45 }
 0x146   :  { %v343_v7 = vmul.f32 %v342_v6, %v324_v54 }
 0x148   :  { %v345_v9 = vsel %vm344_vm4, %v324_v54, %v343_v7  ;;  %vm670_vm4 = vcmask 1043456  }
 0x149   :  { %v2509_v10 = vsel %vm346_vm6, %v347_v8, %v345_v9  ;;  %vm1011_vm6 = vcmask 257024  }
 0x14a   :  { %v354_v11 = vsel %vm353_vm5, %v2509_v10, -inf }
 0x14b   :  { %355 = vmax.xlane.f32.xlu1 %v354_v11 }
 0x1b6   :  { %v352_v14 = vpop.xlane.xlu1 %351 }
 0x1b7   :  { %vm359_vm7 = vcmp.ge.f32.partialorder %v2505_v3, %v352_v14 }
 0x1b8   :  { %v361_v15 = vsel %vm359_vm7, %v2513_v13, 8 }
 0x1b9   :  { %v363_v16 = vsel %vm349_vm2, %v361_v15, 2147483647 }
 0x1ba   :  { %v365_v17 = vshra.s32 %v363_v16, 16  ;;  %v364_v25 = vand.u32 65535, %v363_v16 }
 0x1bc   :  { %v367_v18 = vcvt.s32.f32 %v365_v17  ;;  %v366_v27 = vcvt.s32.f32 %v364_v25  ;;  %v2541_v17 = vld [vmem:[#allocation8 + $0x10] sm:$0xff]  ;;  %v2177_v25 = vld [vmem:[#allocation10] ss:$0 sm:$0xff] }
 0x1bd   :  { %505 = vmatpush.msrb.mxu3 %v2541_v17 }
 0x1be   :  { %368 = vmin.xlane.f32.xlu2 %v367_v18  ;;  %v356_v19 = vpop.xlane.xlu1 %355 }
 0x1bf   :  { %vm360_vm8 = vcmp.ge.f32.partialorder %v2509_v10, %v356_v19 }
 0x1c0   :  { %v362_v20 = vsel %vm360_vm8, %v2513_v13, 8 }
 0x1c1   :  { %v378_v21 = vsel %vm353_vm5, %v362_v20, 2147483647  ;;  %vm957_vm5 = vcmask 195584  }
 0x1c2   :  { %v380_v22 = vshra.s32 %v378_v21, 16  ;;  %v379_v29 = vand.u32 65535, %v378_v21 }
 0x1c4   :  { %v382_v23 = vcvt.s32.f32 %v380_v22  ;;  %v381_v32 = vcvt.s32.f32 %v379_v29 }
 0x1c6   :  { %383 = vmin.xlane.f32.xlu2 %v382_v23 }
 0x1de   :  { %416 = vperm.xlu2 %2114, %v2521_v30  }
 0x1e6   :  { %426 = vrot.lane.b32.xlu2 %v2521_v30, %s2427_s4 }
 0x1ee   :  { %428 = vrot.lane.b32.xlu2 %v103_v34, %s2427_s4 }
 0x231   :  { %v369_v26 = vpop.xlane.xlu2 %368 }
 0x232   :  { %vm370_vm9 = vcmp.eq.f32.partialorder %v367_v18, %v369_v26  ;;  %v375_v40 = vcvt.f32.s32 %v369_v26 }
 0x233   :  { %v371_v28 = vsel %vm370_vm9, %v366_v27, inf }
 0x234   :  { %372 = vmin.xlane.f32.xlu0 %v371_v28  ;;  %v376_v43 = vshll.u32 %v375_v40, 16  ;;  %v107_v40 = vld [vmem:[#allocation7 + $0x40] sm:$0xff] }
 0x239   :  { %v384_v31 = vpop.xlane.xlu2 %383 }
 0x23a   :  { %vm385_vm10 = vcmp.eq.f32.partialorder %v382_v23, %v384_v31  ;;  %v390_v50 = vcvt.f32.s32 %v384_v31 }
 0x23b   :  { %v386_v33 = vsel %vm385_vm10, %v381_v32, inf }
 0x23c   :  { %387 = vmin.xlane.f32.xlu1 %v386_v33  ;;  %v391_v55 = vshll.u32 %v390_v50, 16  ;;  %v106_v33 = vld [vmem:[#allocation7 + $0x30] sm:$0xff] }
 0x241   :  { %v417_v4 = vpop.permute.xlu2 %416 }
 0x249   :  { %v427_v19 = vpop.permute.xlu2 %426 }
 0x251   :  { %v429_v21 = vpop.permute.xlu2 %428 }
 0x255   :  { %421 = vperm.xlu1 %2115, %v103_v34  }
 0x2a7   :  { %v373_v42 = vpop.xlane.xlu0 %372 }
 0x2a8   :  { %v374_v44 = vcvt.f32.s32 %v373_v42 }
 0x2aa   :  { %v377_v46 = vadd.s32 %v376_v43, %v374_v44  ;;  %v104_v43 = vld [vmem:[#allocation7 + $0x10] sm:$0xff] }
 0x2ac   :  { %v393_v51 = vsub.s32 8, %v377_v46 }
 0x2ae   :  { %v395_v53 = vcvt.s32.f32 %v393_v51 }
 0x2af   :  { %v388_v54 = vpop.xlane.xlu1 %387 }
 0x2b0   :  { %v404_v56 = vmul.f32 %v403_v52, %v395_v53  ;;  %v389_v57 = vcvt.f32.s32 %v388_v54 }
 0x2b2   :  { %v392_v58 = vadd.s32 %v391_v55, %v389_v57  ;;  %vm2077_vm12 = vcmp.lt.s32.totalorder %v404_v56, 0  ;;  %v2078_v59 = vceil.f32 %v404_v56  ;;  %v2079_v60 = vfloor.f32 %v404_v56 }
 0x2b4   :  { %v394_v61 = vsub.s32 8, %v392_v58  ;;  %v2080_v62 = vsel %vm2077_vm12, %v2078_v59, %v2079_v60 }
 0x2b5   :  { %v2081_v63 = vcvt.f32.s32 %v2080_v62 }
 0x2b6   :  { %v396_v0 = vcvt.s32.f32 %v394_v61 }
 0x2b7   :  { %v408_v1 = vadd.s32 %v2081_v63, %v377_v46  ;;  %v105_v46 = vld [vmem:[#allocation7 + $0x20] sm:$0xff] }
 0x2b8   :  { %v405_v2 = vmul.f32 %v403_v52, %v396_v0 }
 0x2b9   :  { %vm410_vm13 = vcmp.le.s32.totalorder %v2513_v13, %v408_v1 }
 0x2ba   :  { %v412_v5 = vsel %vm410_vm13, %v2505_v3, 0.0  ;;  %vm2082_vm14 = vcmp.lt.s32.totalorder %v405_v2, 0  ;;  %v2083_v6 = vceil.f32 %v405_v2  ;;  %v2084_v7 = vfloor.f32 %v405_v2  ;;  %v2544_v3 = vld [vmem:[#allocation8] sm:$0xff] }
 0x2bb   :  { %v424_v8 = vmul.f32 %v417_v4, %v412_v5  ;;  %v2121_v18 = vpack.i.bf16 %v2544_v3, %v2541_v17  ;;  %506 = vmatpush.msrb.mxu3 %v2544_v3 }
 0x2bc   :  { %v2085_v9 = vsel %vm2082_vm14, %v2083_v6, %v2084_v7  ;;  %vm1131_vm14 = vcmask 523264  }
 0x2bd   :  { %2000 = vmatmul.msk.f32.vlgmr.msrb.gmra.mxu2 %vm349_vm2, %v424_v8  ;;  %v2086_v11 = vcvt.f32.s32 %v2085_v9 }
 0x2bf   :  { %v409_v12 = vadd.s32 %v2086_v11, %v392_v58 }
 0x2c1   :  { %vm411_vm15 = vcmp.le.s32.totalorder %v2513_v13, %v409_v12 }
 0x2c2   :  { %v413_v14 = vsel %vm411_vm15, %v2509_v10, 0.0 }
 0x2c7   :  { %v422_v15 = vpop.permute.xlu1 %421 }
 0x2c8   :  { %v425_v16 = vmul.f32 %v422_v15, %v413_v14 }
 0x2ca   :  { %2001 = vmatmul.msk.f32.gmra.mxu2 %vm349_vm2, %v425_v16 }
 0x340   :  { %v455_v20 = vpop.f32.mrf.mxu2 }
 0x341   :  { %v2549_v13 = vadd.f32 %v455_v20, %v427_v19 }
 0x343   :  { %v461_v10 = vmax.f32 %v2549_v13, 0.0 }
 0x345   :  { %2002 = vmatmul.msk.f32.vlgmr.msrb.gmra.mxu3 %vm484_vm1, %v461_v10 }
 0x34d   :  { %v458_v22 = vpop.f32.mrf.mxu2 }
 0x34e   :  { %v2555_v23 = vadd.f32 %v458_v22, %v429_v21 }
 0x350   :  { %v462_v24 = vmax.f32 %v2555_v23, 0.0 }
 0x352   :  { %2003 = vmatmul.msk.f32.gmra.mxu3 %vm484_vm1, %v462_v24 }
 0x3c8   :  { %v508_v26 = vpop.f32.mrf.mxu3 }
 0x3c9   :  { %v2561_v27 = vadd.f32 %v2177_v25, %v508_v26 }
 0x3cb   :  { %629 = vrot.lane.b32.xlu2 %v2561_v27, %s2430_s18  ;;  %594 = vrot.lane.b32.xlu0 %v2561_v27, %s2431_s19 }
 0x3cc   :  { %633 = vrot.lane.b32.xlu1 %v2561_v27, %s2432_s20 }
 0x3d3   :  { %555 = vrot.lane.b32.xlu0 %v2561_v27, %s2433_s21 }
 0x3d4   :  { %590 = vrot.lane.b32.xlu1 %v2561_v27, %s2434_s22 }
 0x3d5   :  { %v511_v28 = vpop.f32.mrf.mxu3 }
 0x3d6   :  { %v2573_v29 = vadd.f32 %v2177_v25, %v511_v28 }
 0x3d8   :  { %596 = vrot.lane.b32.xlu2 %v2573_v29, %s2431_s19 }
 0x3db   :  { %551 = vrot.lane.b32.xlu0 %v2561_v27, %s2427_s4 }
 0x3dc   :  { %635 = vrot.lane.b32.xlu1 %v2573_v29, %s2432_s20 }
 0x3e0   :  { %557 = vrot.lane.b32.xlu2 %v2573_v29, %s2433_s21 }
 0x3e3   :  { %698 = vrot.lane.b32.xlu0 %v107_v40, %s2433_s21 }
 0x3e4   :  { %518 = vrot.lane.b32.xlu1 %v2573_v29, %s2435_s23 }
 0x3e8   :  { %631 = vrot.lane.b32.xlu2 %v2573_v29, %s2430_s18 }
 0x3eb   :  { %692 = vrot.lane.b32.xlu0 %v104_v43, %s2433_s21 }
 0x3ec   :  { %516 = vrot.lane.b32.xlu1 %v2561_v27, %s2435_s23 }
 0x3f0   :  { %592 = vrot.lane.b32.xlu2 %v2573_v29, %s2434_s22 }
 0x3f4   :  { %553 = vrot.lane.b32.xlu1 %v2573_v29, %s2427_s4 }
 0x3f8   :  { %700 = vrot.lane.b32.xlu2 %v108_v41, %s2433_s21 }
 0x3fc   :  { %696 = vrot.lane.b32.xlu1 %v106_v33, %s2433_s21 }
 0x400   :  { %694 = vrot.lane.b32.xlu2 %v105_v46, %s2433_s21 }
 0x425   :  { %v630_v31 = vpop.permute.xlu2 %629 }
 0x432   :  { %v597_v32 = vpop.permute.xlu2 %596 }
 0x433   :  { %2012 = vmatpush.xpose.msk.msra.mxu2 %vm349_vm2, %v597_v32 }
 0x43a   :  { %v558_v34 = vpop.permute.xlu2 %557 }
 0x43b   :  { %2008 = vmatpush.xpose.msk.msra.mxu1 %vm349_vm2, %v558_v34 }
 0x43d   :  { %v595_v35 = vpop.permute.xlu0 %594 }
 0x43e   :  { %v634_v36 = vpop.permute.xlu1 %633  ;;  %2013 = vmatpush.xpose.msk.msra.mxu2 %vm349_vm2, %v595_v35 }
 0x442   :  { %v632_v37 = vpop.permute.xlu2 %631 }
 0x445   :  { %v556_v38 = vpop.permute.xlu0 %555 }
 0x446   :  { %v591_v39 = vpop.permute.xlu1 %590  ;;  %2009 = vmatpush.xpose.msk.msra.mxu1 %vm349_vm2, %v556_v38 }
 0x447   :  { %2014 = vmatmul.msk.f32.vlgmr.msra.gmra.mxu2 %vm349_vm2, %v591_v39 }
 0x44a   :  { %v593_v44 = vpop.permute.xlu2 %592 }
 0x44d   :  { %v552_v42 = vpop.permute.xlu0 %551 }
 0x44e   :  { %v636_v45 = vpop.permute.xlu1 %635  ;;  %2010 = vmatmul.msk.f32.vlgmr.msra.gmra.mxu1 %vm349_vm2, %v552_v42 }
 0x44f   :  { %2015 = vmatmul.msk.f32.gmra.mxu2 %vm349_vm2, %v593_v44  ;;  %2016 = vmatpush.xpose.msk.msra.mxu3 %vm349_vm2, %v636_v45 }
 0x452   :  { %v2622_v61 = vpop.permute.xlu2 %700 }
 0x453   :  { %2017 = vmatpush.xpose.msk.msra.mxu3 %vm349_vm2, %v634_v36 }
 0x455   :  { %v2620_v59 = vpop.permute.xlu0 %698 }
 0x456   :  { %2018 = vmatmul.msk.f32.vlgmr.msra.gmra.mxu3 %vm349_vm2, %v630_v31  ;;  %v519_v50 = vpop.permute.xlu1 %518 }
 0x457   :  { %2004 = vmatpush.xpose.msk.msra.mxu0 %vm349_vm2, %v519_v50 }
 0x45a   :  { %v2627_v7 = vpop.permute.xlu2 %694 }
 0x45d   :  { %v2629_v8 = vpop.permute.xlu0 %692 }
 0x45e   :  { %2019 = vmatmul.msk.f32.gmra.mxu3 %vm349_vm2, %v632_v37  ;;  %v517_v51 = vpop.permute.xlu1 %516 }
 0x45f   :  { %2005 = vmatpush.xpose.msk.msra.mxu0 %vm349_vm2, %v517_v51 }
 0x462   :  { %2006 = vmatmul.msk.f32.vlgmr.msra.gmra.mxu0 %vm349_vm2, %v2561_v27 }
 0x466   :  { %v554_v52 = vpop.permute.xlu1 %553 }
 0x467   :  { %2011 = vmatmul.msk.f32.gmra.mxu1 %vm349_vm2, %v554_v52 }
 0x46a   :  { %2007 = vmatmul.msk.f32.gmra.mxu0 %vm349_vm2, %v2573_v29 }
 0x46e   :  { %v2616_v53 = vpop.permute.xlu1 %696 }
 0x4ca   :  { %v623_v54 = vpop.f32.mrf.mxu2 }
 0x4cb   :  { %v711_v55 = vadd.f32 %v2616_v53, %v623_v54  ;;  %v584_v62 = vpop.f32.mrf.mxu1 }
 0x4cc   :  { %v671_v5 = vrot.slane %v584_v62, 4 }
 0x4cd   :  { %v724_v56 = vsel %vm714_vm3, %v711_v55, -inf }
 0x4ce   :  { %725 = vmax.xlane.f32.xlu2 %v724_v56 }
 0x4d2   :  { %v626_v60 = vpop.f32.mrf.mxu2 }
 0x4d9   :  { %v662_v57 = vpop.f32.mrf.mxu3 }
 0x4da   :  { %v678_v58 = vrot.slane %v662_v57, 4 }
 0x4dc   :  { %v684_v63 = vsel %vm670_vm4, %v626_v60, %v678_v58 }
 0x4dd   :  { %v712_v0 = vadd.f32 %v2620_v59, %v684_v63 }
 0x4df   :  { %v545_v1 = vpop.f32.mrf.mxu0  ;;  %v727_v2 = vsel %vm714_vm3, %v712_v0, -inf }
 0x4e0   :  { %728 = vmax.xlane.f32.xlu1 %v727_v2 }
 0x4e1   :  { %v665_v34 = vpop.f32.mrf.mxu3 }
 0x4e4   :  { %v587_v4 = vpop.f32.mrf.mxu1 }
 0x4e5   :  { %v672_v6 = vrot.slane %v587_v4, 4 }
 0x4e7   :  { %v673_v9 = vsel %vm670_vm4, %v671_v5, %v672_v6  ;;  %v548_v11 = vpop.f32.mrf.mxu0 }
 0x4e8   :  { %v710_v12 = vadd.f32 %v2627_v7, %v673_v9  ;;  %v683_v14 = vsel %vm670_vm4, %v548_v11, %v671_v5 }
 0x4e9   :  { %v709_v15 = vadd.f32 %v2629_v8, %v683_v14 }
 0x4ea   :  { %v721_v16 = vsel %vm714_vm3, %v710_v12, -inf }
 0x4eb   :  { %722 = vmax.xlane.f32.xlu2 %v721_v16  ;;  %v718_v19 = vsel %vm714_vm3, %v709_v15, -inf }
 0x4ec   :  { %719 = vmax.xlane.f32.xlu0 %v718_v19 }
 0x4f9   :  { %690 = vrot.lane.b32.xlu1 %v2521_v30, %s2433_s21  ;;  %v679_v30 = vrot.slane %v665_v34, 4 }
 0x4fb   :  { %v680_v40 = vsel %vm670_vm4, %v678_v58, %v679_v30 }
 0x4fc   :  { %v713_v41 = vadd.f32 %v2622_v61, %v680_v40 }
 0x4fe   :  { %v730_v42 = vsel %vm714_vm3, %v713_v41, -inf }
 0x541   :  { %v726_v20 = vpop.xlane.xlu2 %725 }
 0x542   :  { %v736_v21 = vsub.f32 %v711_v55, %v726_v20 }
 0x544   :  { %v745_v22 = vmul.f32 1.442695, %v736_v21 }
 0x546   :  { %2199 = vpow2.f32 %v745_v22 }
 0x54c   :  { %v2200_v25 = vpop.eup %2199 }
 0x54d   :  { %v760_v26 = vsel %vm714_vm3, %v2200_v25, 0.0 }
 0x54e   :  { %761 = vadd.xlane.f32.xlu2 %v760_v26 }
 0x553   :  { %v729_v33 = vpop.xlane.xlu1 %728 }
 0x554   :  { %v737_v43 = vsub.f32 %v712_v0, %v729_v33 }
 0x556   :  { %v747_v44 = vmul.f32 1.442695, %v737_v43 }
 0x55e   :  { %v723_v50 = vpop.xlane.xlu2 %722 }
 0x55f   :  { %v720_v28 = vpop.xlane.xlu0 %719  ;;  %v735_v51 = vsub.f32 %v710_v12, %v723_v50 }
 0x560   :  { %v734_v31 = vsub.f32 %v709_v15, %v720_v28 }
 0x561   :  { %v743_v52 = vmul.f32 1.442695, %v735_v51 }
 0x562   :  { %v741_v32 = vmul.f32 1.442695, %v734_v31 }
 0x564   :  { %2201 = vpow2.f32 %v741_v32 }
 0x565   :  { %2203 = vpow2.f32 %v747_v44 }
 0x566   :  { %857 = vrot.lane.b32.xlu2 %v2573_v29, %s2436_s25  ;;  %2205 = vpow2.f32 %v743_v52 }
 0x56a   :  { %v2642_v35 = vpop.eup %2201 }
 0x56b   :  { %v2644_v36 = vpop.permute.xlu1 %690  ;;  %v754_v37 = vsel %vm714_vm3, %v2642_v35, 0.0  ;;  %v2204_v45 = vpop.eup %2203 }
 0x56c   :  { %v708_v38 = vadd.f32 %v2644_v36, %v545_v1  ;;  %755 = vadd.xlane.f32.xlu1 %v754_v37  ;;  %v763_v46 = vsel %vm714_vm3, %v2204_v45, 0.0  ;;  %v2206_v54 = vpop.eup %2205 }
 0x56d   :  { %v757_v55 = vsel %vm714_vm3, %v2206_v54, 0.0 }
 0x56e   :  { %855 = vrot.lane.b32.xlu2 %v2561_v27, %s2436_s25  ;;  %v715_v39 = vsel %vm714_vm3, %v708_v38, -inf }
 0x56f   :  { %716 = vmax.xlane.f32.xlu0 %v715_v39 }
 0x577   :  { %731 = vmax.xlane.f32.xlu0 %v730_v42 }
 0x58b   :  { %897 = vrot.lane.b32.xlu0 %v2573_v29, %s2437_s26 }
 0x593   :  { %895 = vrot.lane.b32.xlu0 %v2561_v27, %s2437_s26 }
 0x597   :  { %764 = vadd.xlane.f32.xlu2 %v763_v46 }
 0x5af   :  { %823 = vrot.lane.b32.xlu2 %v2573_v29, %s2438_s27 }
 0x5b7   :  { %783 = vrot.lane.b32.xlu2 %v2573_v29, %s2439_s28 }
 0x5bd   :  { %758 = vadd.xlane.f32.xlu0 %v757_v55 }
 0x5c1   :  { %v762_v56 = vpop.xlane.xlu2 %761 }
 0x5c2   :  { %2207 = vrcp.f32 %v762_v56 }
 0x5c8   :  { %v2208_v58 = vpop.eup %2207 }
 0x5c9   :  { %v858_v57 = vpop.permute.xlu2 %857  ;;  %v778_v60 = vmul.f32 %v2208_v58, %v2200_v25 }
 0x5ca   :  { %2026 = vmatpush.msk.msrb.mxu2 %vm670_vm4, %v858_v57 }
 0x5d1   :  { %v856_v62 = vpop.permute.xlu2 %855 }
 0x5d2   :  { %883 = vmatpush.msrb.mxu2 %v856_v62 }
 0x5d3   :  { %2027 = vmatmul.msk.f32.vlgmr.msrb.gmra.mxu2 %vm714_vm3, %v778_v60 }
 0x5df   :  { %v756_v26 = vpop.xlane.xlu1 %755 }
 0x5e2   :  { %v717_v63 = vpop.xlane.xlu0 %716 }
 0x5e3   :  { %v733_v0 = vsub.f32 %v708_v38, %v717_v63 }
 0x5e5   :  { %v739_v1 = vmul.f32 1.442695, %v733_v0 }
 0x5e7   :  { %2209 = vpow2.f32 %v739_v1 }
 0x5ea   :  { %v732_v29 = vpop.xlane.xlu0 %731 }
 0x5eb   :  { %v738_v2 = vsub.f32 %v713_v41, %v732_v29 }
 0x5ed   :  { %v2210_v4 = vpop.eup %2209  ;;  %v749_v5 = vmul.f32 1.442695, %v738_v2 }
 0x5ee   :  { %v751_v6 = vsel %vm714_vm3, %v2210_v4, 0.0 }
 0x5ef   :  { %2211 = vpow2.f32 %v749_v5  ;;  %752 = vadd.xlane.f32.xlu1 %v751_v6 }
 0x5f5   :  { %v2212_v9 = vpop.eup %2211 }
 0x5f6   :  { %v766_v11 = vsel %vm714_vm3, %v2212_v9, 0.0 }
 0x5f7   :  { %767 = vadd.xlane.f32.xlu0 %v766_v11  ;;  %v2178_v11 = vld [vmem:[#allocation10 + $0x1] ss:$0 sm:$0xff] }
 0x5fd   :  { %v898_v12 = vpop.permute.xlu0 %897 }
 0x5fe   :  { %2029 = vmatpush.msk.msrb.mxu3 %vm670_vm4, %v898_v12 }
 0x605   :  { %v896_v14 = vpop.permute.xlu0 %895 }
 0x606   :  { %921 = vmatpush.msrb.mxu3 %v896_v14 }
 0x608   :  { %2117 = vrot.lane.b32.xlu1 %v2116_v49, %s2440_s29 }
 0x60a   :  { %v765_v15 = vpop.xlane.xlu2 %764 }
 0x60b   :  { %2213 = vrcp.f32 %v765_v15  ;;  %821 = vrot.lane.b32.xlu0 %v2561_v27, %s2438_s27 }
 0x611   :  { %v2214_v16 = vpop.eup %2213 }
 0x612   :  { %v824_v19 = vpop.permute.xlu2 %823  ;;  %v779_v20 = vmul.f32 %v2214_v16, %v2204_v45 }
 0x613   :  { %2023 = vmatpush.msk.msrb.mxu1 %vm670_vm4, %v824_v19  ;;  %781 = vrot.lane.b32.xlu0 %v2561_v27, %s2439_s28 }
 0x614   :  { %2028 = vmatmul.msk.f32.gmra.mxu2 %vm714_vm3, %v779_v20  ;;  %v892_v33 = vrot.slane %v779_v20, 4 }
 0x61a   :  { %v784_v21 = vpop.permute.xlu2 %783 }
 0x61b   :  { %2020 = vmatpush.msk.msrb.mxu0 %vm670_vm4, %v784_v21  ;;  %2122 = vrot.lane.b32.xlu0 %v2121_v18, %s2440_s29 }
 0x630   :  { %v759_v27 = vpop.xlane.xlu0 %758 }
 0x656   :  { %v885_v22 = vpop.f32.mrf.mxu2 }
 0x657   :  { %939 = vrot.lane.b32.xlu2 %v885_v22, %s2423_s8 }
 0x662   :  { %v753_v3 = vpop.xlane.xlu1 %752 }
 0x66a   :  { %v768_v25 = vpop.xlane.xlu0 %767 }
 0x66b   :  { %2215 = vrcp.f32 %v768_v25 }
 0x66c   :  { %2217 = vrcp.f32 %v759_v27  ;;  %v2442_v27 = vmov 32.0  }
 0x66d   :  { %2219 = vrcp.f32 %v756_v26 }
 0x66e   :  { %2221 = vrcp.f32 %v753_v3 }
 0x66f   :  { %2223 = vrcp.f32 %v2442_v27 }
 0x671   :  { %v2216_v28 = vpop.eup %2215 }
 0x672   :  { %v780_v31 = vmul.f32 %v2216_v28, %v2212_v9  ;;  %v2218_v32 = vpop.eup %2217 }
 0x673   :  { %v2220_v48 = vpop.eup %2219  ;;  %v777_v49 = vmul.f32 %v2218_v32, %v2206_v54 }
 0x674   :  { %v893_v47 = vrot.slane %v780_v31, 4  ;;  %v776_v17 = vmul.f32 %v2220_v48, %v2642_v35  ;;  %v2222_v39 = vpop.eup %2221 }
 0x675   :  { %v819_v18 = vrot.slane %v777_v49, 4  ;;  %v775_v40 = vmul.f32 %v2222_v39, %v2210_v4  ;;  %v2224_v25 = vpop.eup %2223 }
 0x676   :  { %v894_v34 = vsel %vm670_vm4, %v892_v33, %v893_v47  ;;  %v818_v30 = vrot.slane %v776_v17, 4  ;;  %v1016_v26 = vmul.f32 32.0, %v2224_v25  ;;  %vm1020_vm7 = vweird.f32 %v2224_v25 }
 0x677   :  { %2030 = vmatmul.msk.f32.vlgmr.msrb.gmra.mxu3 %vm714_vm3, %v894_v34 }
 0x678   :  { %v820_v38 = vsel %vm670_vm4, %v818_v30, %v819_v18  ;;  %v1017_v28 = vsub.f32 1.0, %v1016_v26  ;;  %v469_v30 = vld [vmem:[#allocation8 + $0x28] sm:$0xff] }
 0x67a   :  { %v2118_v46 = vpop.permute.xlu1 %2117  ;;  %v1018_v31 = vmul.f32 %v2224_v25, %v1017_v28 }
 0x67b   :  { %v2120_v50 = vunpack.i.h.bf16 %v2118_v46  ;;  %v2119_v51 = vunpack.i.l.bf16 %v2118_v46 }
 0x67c   :  { %v1019_v13 = vadd.f32 %v2224_v25, %v1018_v31 }
 0x67d   :  { %v822_v37 = vpop.permute.xlu0 %821 }
 0x67e   :  { %847 = vmatpush.msrb.mxu1 %v822_v37  ;;  %v473_v37 = vld [vmem:[#allocation8 + $0x68] sm:$0xff] }
 0x67f   :  { %2024 = vmatmul.msk.f32.vlgmr.msrb.gmra.mxu1 %vm714_vm3, %v820_v38  ;;  %2031 = vmatmul.msk.f32.gmra.mxu3 %vm714_vm3, %v893_v47  ;;  %v474_v38 = vld [vmem:[#allocation8 + $0x78] sm:$0xff] }
 0x680   :  { %v2126_v39 = vpack.i.bf16 %v473_v37, %v474_v38  ;;  %v2182_v37 = vld [vmem:[#allocation10 + $0x5] ss:$0 sm:$0xff] }
 0x685   :  { %v782_v41 = vpop.permute.xlu0 %781 }
 0x686   :  { %809 = vmatpush.msrb.mxu0 %v782_v41  ;;  %v467_v41 = vld [vmem:[#allocation8 + $0x8] sm:$0xff] }
 0x687   :  { %2021 = vmatmul.msk.f32.vlgmr.msrb.gmra.mxu0 %vm714_vm3, %v775_v40  ;;  %2025 = vmatmul.msk.f32.gmra.mxu1 %vm714_vm3, %v819_v18  ;;  %v470_v18 = vld [vmem:[#allocation8 + $0x38] sm:$0xff] }
 0x688   :  { %995 = vmatpush.msra.mxu0 %v2119_v51  ;;  %1085 = vmatpush.msra.mxu1 %v470_v18  ;;  %v468_v40 = vld [vmem:[#allocation8 + $0x18] sm:$0xff] }
 0x68a   :  { %996 = vmatpush.msra.mxu0 %v2120_v50  ;;  %1086 = vmatpush.msra.mxu1 %v469_v30 }
 0x68c   :  { %1087 = vmatpush.msra.mxu1 %v468_v40 }
 0x68d   :  { %v2123_v52 = vpop.permute.xlu0 %2122 }
 0x68e   :  { %v2124_v54 = vunpack.i.l.bf16 %v2123_v52  ;;  %v2125_v55 = vunpack.i.h.bf16 %v2123_v52  ;;  %1088 = vmatpush.msra.mxu1 %v467_v41 }
 0x68f   :  { %2022 = vmatmul.msk.f32.gmra.mxu0 %vm714_vm3, %v776_v17 }
 0x690   :  { %997 = vmatpush.msra.mxu0 %v2124_v54 }
 0x692   :  { %998 = vmatpush.msra.mxu0 %v2125_v55 }
 0x697   :  { %v888_v43 = vpop.f32.mrf.mxu2 }
 0x6b1   :  { %v940_v56 = vpop.permute.xlu2 %939 }
 0x6fa   :  { %v923_v35 = vpop.f32.mrf.mxu3 }
 0x6fb   :  { %947 = vrot.lane.b32.xlu0 %v923_v35, %s2441_s30  ;;  %v471_v35 = vld [vmem:[#allocation8 + $0x48] sm:$0xff] }
 0x6fc   :  { %v849_v42 = vpop.f32.mrf.mxu1 }
 0x6fd   :  { %931 = vrot.lane.b32.xlu2 %v849_v42, %s2420_s24  ;;  %v472_v42 = vld [vmem:[#allocation8 + $0x58] sm:$0xff] }
 0x702   :  { %v926_v44 = vpop.f32.mrf.mxu3 }
 0x703   :  { %941 = vrot.lane.b32.xlu0 %v888_v43, %s2423_s8  ;;  %949 = vrot.lane.b32.xlu1 %v926_v44, %s2441_s30  ;;  %v2131_v43 = vpack.i.bf16 %v471_v35, %v472_v42  ;;  %v2136_v44 = vpack.i.bf16 %v469_v30, %v470_v18 }
 0x704   :  { %v852_v45 = vpop.f32.mrf.mxu1  ;;  %v811_v58 = vpop.f32.mrf.mxu0 }
 0x705   :  { %933 = vrot.lane.b32.xlu2 %v852_v45, %s2420_s24  ;;  %v2141_v45 = vpack.i.bf16 %v467_v41, %v468_v40 }
 0x70c   :  { %v814_v29 = vpop.f32.mrf.mxu0 }
 0x757   :  { %v932_v57 = vpop.permute.xlu2 %931 }
 0x758   :  { %v953_v60 = vsel %vm349_vm2, %v811_v58, %v932_v57 }
 0x759   :  { %v955_v63 = vsel %vm116_vm0, %v953_v60, %v940_v56 }
 0x75f   :  { %v934_v1 = vpop.permute.xlu2 %933 }
 0x760   :  { %v954_v2 = vsel %vm349_vm2, %v814_v29, %v934_v1  ;;  %v2179_v1 = vld [vmem:[#allocation10 + $0x2] ss:$0 sm:$0xff] }
 0x76d   :  { %v948_v62 = vpop.permute.xlu0 %947 }
 0x76e   :  { %v958_v0 = vsel %vm957_vm5, %v955_v63, %v948_v62 }
 0x76f   :  { %2032 = vmatmul.msk.f32.vlgmr.msra.gmra.mxu0 %vm484_vm1, %v958_v0 }
 0x775   :  { %v942_v4 = vpop.permute.xlu0 %941  ;;  %v950_v5 = vpop.permute.xlu1 %949 }
 0x776   :  { %v956_v6 = vsel %vm116_vm0, %v954_v2, %v942_v4 }
 0x777   :  { %v959_v9 = vsel %vm957_vm5, %v956_v6, %v950_v5  ;;  %v2180_v6 = vld [vmem:[#allocation10 + $0x3] ss:$0 sm:$0xff] }
 0x778   :  { %2033 = vmatmul.msk.f32.gmra.mxu0 %vm484_vm1, %v959_v9 }
 0x7ec   :  { %v1000_v12 = vpop.f32.mrf.mxu0 }
 0x7ed   :  { %v1001_v14 = vadd.f32 %v2178_v11, %v1000_v12 }
 0x7ef   :  { %v1006_v15 = vadd.f32 %v1001_v14, %v461_v10  ;;  %v2714_v10 = vsel %vm1020_vm7, %v2224_v25, %v1019_v13 }
 0x7f1   :  { %v1008_v16 = vsel %vm484_vm1, %v1006_v15, 0.0 }
 0x7f2   :  { %1009 = vadd.xlane.f32.xlu2 %v1008_v16 }
 0x7f5   :  { %v1003_v19 = vpop.f32.mrf.mxu0 }
 0x7f6   :  { %v1004_v20 = vadd.f32 %v2178_v11, %v1003_v19 }
 0x7f8   :  { %v1007_v21 = vadd.f32 %v1004_v20, %v462_v24 }
 0x7fa   :  { %v1012_v22 = vsel %vm1011_vm6, %v1007_v21, 0.0 }
 0x7fb   :  { %1013 = vadd.xlane.f32.xlu0 %v1012_v22 }
 0x80f   :  { %2127 = vrot.lane.b32.xlu0 %v2126_v39, %s2439_s28 }
 0x817   :  { %2142 = vrot.lane.b32.xlu0 %v2141_v45, %s2439_s28 }
 0x865   :  { %v1010_v32 = vpop.xlane.xlu2 %1009 }
 0x866   :  { %v1022_v33 = vmul.f32 %v2714_v10, %v1010_v32 }
 0x868   :  { %v1024_v47 = vsub.f32 %v1006_v15, %v1022_v33 }
 0x86a   :  { %v1026_v48 = vmul.f32 %v1024_v47, %v1024_v47 }
 0x86c   :  { %v1028_v23 = vsel %vm484_vm1, %v1026_v48, 0.0 }
 0x86d   :  { %1029 = vadd.xlane.f32.xlu1 %v1028_v23 }
 0x86e   :  { %v1014_v24 = vpop.xlane.xlu0 %1013 }
 0x86f   :  { %v1023_v49 = vmul.f32 %v2714_v10, %v1014_v24  ;;  %v2181_v24 = vld [vmem:[#allocation10 + $0x4] ss:$0 sm:$0xff] }
 0x871   :  { %v1025_v34 = vsub.f32 %v1007_v21, %v1023_v49 }
 0x873   :  { %v1027_v17 = vmul.f32 %v1025_v34, %v1025_v34 }
 0x875   :  { %v1031_v3 = vsel %vm1011_vm6, %v1027_v17, 0.0 }
 0x876   :  { %1032 = vadd.xlane.f32.xlu2 %v1031_v3 }
 0x881   :  { %v2128_v22 = vpop.permute.xlu0 %2127 }
 0x882   :  { %v2130_v27 = vunpack.i.h.bf16 %v2128_v22  ;;  %v2129_v25 = vunpack.i.l.bf16 %v2128_v22  ;;  %v2183_v22 = vld [vmem:[#allocation10 + $0x6] ss:$0 sm:$0xff] }
 0x884   :  { %1146 = vmatpush.msra.mxu2 %v2129_v25 }
 0x886   :  { %2132 = vrot.lane.b32.xlu1 %v2131_v43, %s2439_s28  ;;  %1147 = vmatpush.msra.mxu2 %v2130_v27 }
 0x889   :  { %v2143_v33 = vpop.permute.xlu0 %2142 }
 0x88a   :  { %v2144_v48 = vunpack.i.l.bf16 %v2143_v33  ;;  %v2145_v23 = vunpack.i.h.bf16 %v2143_v33 }
 0x88e   :  { %2137 = vrot.lane.b32.xlu2 %v2136_v44, %s2439_s28 }
 0x8e0   :  { %v1030_v46 = vpop.xlane.xlu1 %1029 }
 0x8e1   :  { %v1034_v50 = vmul.f32 %v1030_v46, %v2714_v10 }
 0x8e3   :  { %v1036_v51 = vadd.f32 1e-05, %v1034_v50 }
 0x8e5   :  { %2225 = vrsqrt.f32 %v1036_v51  ;;  %vm1044_vm9 = vweird.f32 %v1036_v51 }
 0x8e9   :  { %v1033_v52 = vpop.xlane.xlu2 %1032 }
 0x8ea   :  { %v1035_v54 = vmul.f32 %v1033_v52, %v2714_v10 }
 0x8eb   :  { %v2226_v55 = vpop.eup %2225 }
 0x8ec   :  { %v1039_v56 = vmul.f32 %v2226_v55, %v1036_v51  ;;  %v1037_v57 = vadd.f32 1e-05, %v1035_v54  ;;  %vm1045_vm8 = vweird.f32 %v2226_v55 }
 0x8ed   :  { %vm1046_vm10 = vmor %vm1044_vm9, %vm1045_vm8 }
 0x8ee   :  { %v1040_v58 = vmul.f32 %v2226_v55, %v1039_v56  ;;  %2227 = vrsqrt.f32 %v1037_v57  ;;  %vm1054_vm12 = vweird.f32 %v1037_v57 }
 0x8f0   :  { %v1041_v60 = vmul.f32 0.5, %v1040_v58 }
 0x8f1   :  { %v2138_v28 = vpop.permute.xlu2 %2137 }
 0x8f2   :  { %v1042_v62 = vsub.f32 1.5, %v1041_v60  ;;  %v2139_v32 = vunpack.i.l.bf16 %v2138_v28  ;;  %v2736_v60 = vld [vmem:[#allocation8 + $0xb0] sm:$0xff] }
 0x8f3   :  { %1254 = vmatpush.msra.mxu3 %v2736_v60 }
 0x8f4   :  { %v2228_v63 = vpop.eup %2227  ;;  %v1043_v0 = vmul.f32 %v2226_v55, %v1042_v62  ;;  %v2739_v62 = vld [vmem:[#allocation8 + $0xa0] sm:$0xff] }
 0x8f5   :  { %v1049_v29 = vmul.f32 %v2228_v63, %v1037_v57  ;;  %vm1055_vm11 = vweird.f32 %v2228_v63  ;;  %1255 = vmatpush.msra.mxu3 %v2739_v62 }
 0x8f6   :  { %v1047_v2 = vsel %vm1046_vm10, %v2226_v55, %v1043_v0  ;;  %vm1056_vm13 = vmor %vm1054_vm12, %vm1055_vm11  ;;  %v2745_v0 = vld [vmem:[#allocation8 + $0x80] sm:$0xff] }
 0x8f7   :  { %v1058_v4 = vmul.f32 %v1047_v2, %v1024_v47  ;;  %v1050_v5 = vmul.f32 %v2228_v63, %v1049_v29  ;;  %v2140_v47 = vunpack.i.h.bf16 %v2138_v28 }
 0x8f8   :  { %v2133_v26 = vpop.permute.xlu1 %2132 }
 0x8f9   :  { %v1061_v9 = vmul.f32 %v2179_v1, %v1058_v4  ;;  %v1051_v11 = vmul.f32 0.5, %v1050_v5  ;;  %v2135_v31 = vunpack.i.h.bf16 %v2133_v26  ;;  %v2134_v13 = vunpack.i.l.bf16 %v2133_v26 }
 0x8fb   :  { %v1052_v12 = vsub.f32 1.5, %v1051_v11  ;;  %v1064_v14 = vadd.f32 %v2180_v6, %v1061_v9  ;;  %1148 = vmatpush.msra.mxu2 %v2134_v13 }
 0x8fd   :  { %v1053_v15 = vmul.f32 %v2228_v63, %v1052_v12  ;;  %2034 = vmatmul.msk.f32.vlgmr.msra.gmra.mxu1 %vm484_vm1, %v1064_v14  ;;  %1149 = vmatpush.msra.mxu2 %v2135_v31  ;;  %v2184_v31 = vld [vmem:[#allocation10 + $0x7] ss:$0 sm:$0xff] }
 0x8ff   :  { %v1057_v16 = vsel %vm1056_vm13, %v2228_v63, %v1053_v15  ;;  %1150 = vmatpush.msra.mxu2 %v2139_v32  ;;  %v2742_v63 = vld [vmem:[#allocation8 + $0x90] sm:$0xff] }
 0x900   :  { %v1059_v19 = vmul.f32 %v1057_v16, %v1025_v34  ;;  %1256 = vmatpush.msra.mxu3 %v2742_v63  ;;  %v2151_v29 = vpack.i.bf16 %v2745_v0, %v2742_v63 }
 0x901   :  { %1151 = vmatpush.msra.mxu2 %v2140_v47 }
 0x902   :  { %v1062_v20 = vmul.f32 %v2179_v1, %v1059_v19  ;;  %1257 = vmatpush.msra.mxu3 %v2745_v0  ;;  %v2146_v1 = vpack.i.bf16 %v2739_v62, %v2736_v60 }
 0x903   :  { %1152 = vmatpush.msra.mxu2 %v2144_v48 }
 0x904   :  { %v1065_v21 = vadd.f32 %v2180_v6, %v1062_v20 }
 0x905   :  { %1153 = vmatpush.msra.mxu2 %v2145_v23 }
 0x906   :  { %2035 = vmatmul.msk.f32.gmra.mxu1 %vm484_vm1, %v1065_v21 }
 0x97a   :  { %v1090_v49 = vpop.f32.mrf.mxu1 }
 0x97b   :  { %v1091_v34 = vadd.f32 %v2181_v24, %v1090_v49 }
 0x97d   :  { %v1096_v17 = vmax.f32 %v1091_v34, 0.0 }
 0x97f   :  { %2036 = vmatmul.msk.f32.vlgmr.msra.gmra.mxu2 %vm1131_vm14, %v1096_v17  ;;  %v2185_v17 = vld [vmem:[#allocation10 + $0x8] ss:$0 sm:$0xff] }
 0x983   :  { %v1093_v3 = vpop.f32.mrf.mxu1 }
 0x984   :  { %v1094_v18 = vadd.f32 %v2181_v24, %v1093_v3 }
 0x986   :  { %v1097_v30 = vmax.f32 %v1094_v18, 0.0 }
 0x988   :  { %2037 = vmatmul.msk.f32.gmra.mxu2 %vm1131_vm14, %v1097_v30 }
 0xa02   :  { %v1155_v38 = vpop.f32.mrf.mxu2 }
 0xa03   :  { %v1156_v39 = vadd.f32 %v2182_v37, %v1155_v38 }
 0xa05   :  { %v1161_v40 = vadd.f32 %v1156_v39, %v1064_v14 }
 0xa07   :  { %v1163_v41 = vsel %vm484_vm1, %v1161_v40, 0.0 }
 0xa08   :  { %1164 = vadd.xlane.f32.xlu0 %v1163_v41 }
 0xa0b   :  { %v1158_v35 = vpop.f32.mrf.mxu2 }
 0xa0c   :  { %v1159_v42 = vadd.f32 %v2182_v37, %v1158_v35 }
 0xa0e   :  { %v1162_v43 = vadd.f32 %v1159_v42, %v1065_v21 }
 0xa10   :  { %v1166_v44 = vsel %vm1011_vm6, %v1162_v43, 0.0 }
 0xa11   :  { %1167 = vadd.xlane.f32.xlu1 %v1166_v44 }
 0xa7b   :  { %v1165_v45 = vpop.xlane.xlu0 %1164 }
 0xa7c   :  { %v1169_v46 = vmul.f32 %v1165_v45, %v2714_v10 }
 0xa7e   :  { %v1171_v50 = vsub.f32 %v1161_v40, %v1169_v46 }
 0xa80   :  { %v1173_v51 = vmul.f32 %v1171_v50, %v1171_v50 }
 0xa82   :  { %v1175_v52 = vsel %vm484_vm1, %v1173_v51, 0.0 }
 0xa83   :  { %1176 = vadd.xlane.f32.xlu2 %v1175_v52 }
 0xa84   :  { %v1168_v54 = vpop.xlane.xlu1 %1167 }
 0xa85   :  { %v1170_v55 = vmul.f32 %v1168_v54, %v2714_v10 }
 0xa87   :  { %v1172_v56 = vsub.f32 %v1162_v43, %v1170_v55 }
 0xa89   :  { %v1174_v57 = vmul.f32 %v1172_v56, %v1172_v56 }
 0xa8b   :  { %v1178_v58 = vsel %vm1011_vm6, %v1174_v57, 0.0 }
 0xa8c   :  { %1179 = vadd.xlane.f32.xlu2 %v1178_v58 }
 0xaf6   :  { %v1177_v2 = vpop.xlane.xlu2 %1176 }
 0xaf7   :  { %v1181_v4 = vmul.f32 %v1177_v2, %v2714_v10 }
 0xaf9   :  { %v1183_v5 = vadd.f32 1e-05, %v1181_v4 }
 0xafb   :  { %2229 = vrsqrt.f32 %v1183_v5  ;;  %vm1191_vm7 = vweird.f32 %v1183_v5 }
 0xaff   :  { %v1180_v6 = vpop.xlane.xlu2 %1179 }
 0xb00   :  { %v1182_v9 = vmul.f32 %v1180_v6, %v2714_v10 }
 0xb01   :  { %v2230_v11 = vpop.eup %2229 }
 0xb02   :  { %v1186_v12 = vmul.f32 %v2230_v11, %v1183_v5  ;;  %v1184_v14 = vadd.f32 1e-05, %v1182_v9  ;;  %vm1192_vm15 = vweird.f32 %v2230_v11 }
 0xb03   :  { %vm1193_vm8 = vmor %vm1191_vm7, %vm1192_vm15 }
 0xb04   :  { %v1187_v15 = vmul.f32 %v2230_v11, %v1186_v12  ;;  %2231 = vrsqrt.f32 %v1184_v14  ;;  %vm1201_vm10 = vweird.f32 %v1184_v14 }
 0xb06   :  { %v1188_v16 = vmul.f32 0.5, %v1187_v15 }
 0xb08   :  { %v1189_v19 = vsub.f32 1.5, %v1188_v16 }
 0xb0a   :  { %v2232_v20 = vpop.eup %2231  ;;  %v1190_v21 = vmul.f32 %v2230_v11, %v1189_v19 }
 0xb0b   :  { %v1196_v27 = vmul.f32 %v2232_v20, %v1184_v14  ;;  %vm1202_vm9 = vweird.f32 %v2232_v20 }
 0xb0c   :  { %v1194_v25 = vsel %vm1193_vm8, %v2230_v11, %v1190_v21  ;;  %vm1203_vm11 = vmor %vm1201_vm10, %vm1202_vm9 }
 0xb0d   :  { %v1205_v26 = vmul.f32 %v1194_v25, %v1171_v50  ;;  %v1197_v28 = vmul.f32 %v2232_v20, %v1196_v27 }
 0xb0f   :  { %v1208_v13 = vmul.f32 %v2183_v22, %v1205_v26  ;;  %v1198_v32 = vmul.f32 0.5, %v1197_v28 }
 0xb11   :  { %v1199_v33 = vsub.f32 1.5, %v1198_v32  ;;  %v2754_v47 = vadd.f32 %v2184_v31, %v1208_v13 }
 0xb13   :  { %v1200_v48 = vmul.f32 %v2232_v20, %v1199_v33  ;;  %2038 = vmatmul.msk.f32.vlgmr.msra.gmra.mxu3 %vm484_vm1, %v2754_v47 }
 0xb15   :  { %v1204_v23 = vsel %vm1203_vm11, %v2232_v20, %v1200_v48 }
 0xb16   :  { %v1206_v24 = vmul.f32 %v1204_v23, %v1172_v56 }
 0xb18   :  { %v1209_v49 = vmul.f32 %v2183_v22, %v1206_v24 }
 0xb1a   :  { %v2758_v34 = vadd.f32 %v2184_v31, %v1209_v49 }
 0xb1c   :  { %2039 = vmatmul.msk.f32.gmra.mxu3 %vm484_vm1, %v2758_v34 }
 0xb96   :  { %v1259_v3 = vpop.f32.mrf.mxu3 }
 0xb97   :  { %v2762_v18 = vadd.f32 %v2185_v17, %v1259_v3 }
 0xb99   :  { %1380 = vrot.lane.b32.xlu1 %v2762_v18, %s2430_s18  ;;  %1345 = vrot.lane.b32.xlu0 %v2762_v18, %s2431_s19 }
 0xb9a   :  { %1384 = vrot.lane.b32.xlu2 %v2762_v18, %s2432_s20 }
 0xb9f   :  { %v1262_v30 = vpop.f32.mrf.mxu3 }
 0xba0   :  { %v2770_v37 = vadd.f32 %v2185_v17, %v1262_v30 }
 0xba2   :  { %1308 = vrot.lane.b32.xlu2 %v2770_v37, %s2433_s21  ;;  %1347 = vrot.lane.b32.xlu1 %v2770_v37, %s2431_s19 }
 0xba3   :  { %1386 = vrot.lane.b32.xlu0 %v2770_v37, %s2432_s20 }
 0xbaa   :  { %1382 = vrot.lane.b32.xlu2 %v2770_v37, %s2430_s18  ;;  %1269 = vrot.lane.b32.xlu1 %v2770_v37, %s2435_s23 }
 0xbab   :  { %1341 = vrot.lane.b32.xlu0 %v2762_v18, %s2434_s22 }
 0xbb2   :  { %1343 = vrot.lane.b32.xlu2 %v2770_v37, %s2434_s22  ;;  %1267 = vrot.lane.b32.xlu1 %v2762_v18, %s2435_s23 }
 0xbb3   :  { %1306 = vrot.lane.b32.xlu0 %v2762_v18, %s2433_s21 }
 0xbba   :  { %1304 = vrot.lane.b32.xlu1 %v2770_v37, %s2427_s4 }
 0xbbb   :  { %1302 = vrot.lane.b32.xlu0 %v2762_v18, %s2427_s4 }
 0xbf4   :  { %v1385_v38 = vpop.permute.xlu2 %1384 }
 0xbfc   :  { %v1309_v39 = vpop.permute.xlu2 %1308 }
 0xbfd   :  { %2044 = vmatpush.xpose.msk.msrb.mxu1 %vm349_vm2, %v1309_v39 }
 0xc04   :  { %v1383_v43 = vpop.permute.xlu2 %1382 }
 0xc0b   :  { %v1381_v40 = vpop.permute.xlu1 %1380  ;;  %v1346_v41 = vpop.permute.xlu0 %1345 }
 0xc0c   :  { %v1344_v50 = vpop.permute.xlu2 %1343 }
 0xc14   :  { %v1348_v35 = vpop.permute.xlu1 %1347 }
 0xc15   :  { %v1387_v42 = vpop.permute.xlu0 %1386  ;;  %2048 = vmatpush.xpose.msk.msrb.mxu2 %vm349_vm2, %v1348_v35 }
 0xc16   :  { %2052 = vmatpush.xpose.msk.msrb.mxu3 %vm349_vm2, %v1387_v42 }
 0xc19   :  { %2049 = vmatpush.xpose.msk.msrb.mxu2 %vm349_vm2, %v1346_v41 }
 0xc1a   :  { %2053 = vmatpush.xpose.msk.msrb.mxu3 %vm349_vm2, %v1385_v38 }
 0xc1c   :  { %v1270_v44 = vpop.permute.xlu1 %1269 }
 0xc1d   :  { %v1342_v45 = vpop.permute.xlu0 %1341  ;;  %2054 = vmatmul.msk.f32.vlgmr.msrb.gmra.mxu3 %vm349_vm2, %v1381_v40  ;;  %2040 = vmatpush.xpose.msk.msrb.mxu0 %vm349_vm2, %v1270_v44 }
 0xc1e   :  { %2050 = vmatmul.msk.f32.vlgmr.msrb.gmra.mxu2 %vm349_vm2, %v1342_v45 }
 0xc24   :  { %v1268_v46 = vpop.permute.xlu1 %1267 }
 0xc25   :  { %v1307_v51 = vpop.permute.xlu0 %1306  ;;  %2055 = vmatmul.msk.f32.gmra.mxu3 %vm349_vm2, %v1383_v43  ;;  %2041 = vmatpush.xpose.msk.msrb.mxu0 %vm349_vm2, %v1268_v46 }
 0xc26   :  { %2045 = vmatpush.xpose.msk.msrb.mxu1 %vm349_vm2, %v1307_v51  ;;  %2051 = vmatmul.msk.f32.gmra.mxu2 %vm349_vm2, %v1344_v50 }
 0xc28   :  { %2042 = vmatmul.msk.f32.vlgmr.msrb.gmra.mxu0 %vm349_vm2, %v2762_v18 }
 0xc2c   :  { %v1305_v54 = vpop.permute.xlu1 %1304 }
 0xc2d   :  { %v1303_v52 = vpop.permute.xlu0 %1302 }
 0xc2e   :  { %2046 = vmatmul.msk.f32.vlgmr.msrb.gmra.mxu1 %vm349_vm2, %v1303_v52 }
 0xc30   :  { %2043 = vmatmul.msk.f32.gmra.mxu0 %vm349_vm2, %v2770_v37 }
 0xc36   :  { %2047 = vmatmul.msk.f32.gmra.mxu1 %vm349_vm2, %v1305_v54 }
 0xca0   :  { %v1413_v2 = vpop.f32.mrf.mxu3 }
 0xca1   :  { %v1374_v55 = vpop.f32.mrf.mxu2  ;;  %v1428_v15 = vrot.slane %v1413_v2, 4 }
 0xca2   :  { %v1438_v5 = vadd.f32 %v1374_v55, %v2616_v53 }
 0xca4   :  { %v1450_v16 = vsel %vm714_vm3, %v1438_v5, -inf }
 0xca5   :  { %v1296_v56 = vpop.f32.mrf.mxu0 }
 0xca6   :  { %v2813_v57 = vadd.f32 %v1296_v56, %v2644_v36 }
 0xca8   :  { %v1441_v58 = vsel %vm714_vm3, %v2813_v57, -inf  ;;  %v1416_v20 = vpop.f32.mrf.mxu3 }
 0xca9   :  { %1442 = vmax.xlane.f32.xlu1 %v1441_v58  ;;  %v1377_v12 = vpop.f32.mrf.mxu2  ;;  %v1429_v27 = vrot.slane %v1416_v20, 4 }
 0xcaa   :  { %v1434_v19 = vsel %vm670_vm4, %v1377_v12, %v1428_v15 }
 0xcab   :  { %v1335_v4 = vpop.f32.mrf.mxu1  ;;  %v1439_v53 = vadd.f32 %v1434_v19, %v2620_v59  ;;  %v1430_v31 = vsel %vm670_vm4, %v1428_v15, %v1429_v27 }
 0xcac   :  { %v1421_v6 = vrot.slane %v1335_v4, 4  ;;  %v1440_v13 = vadd.f32 %v1430_v31, %v2622_v61 }
 0xcad   :  { %v1299_v9 = vpop.f32.mrf.mxu0  ;;  %v1453_v28 = vsel %vm714_vm3, %v1439_v53, -inf }
 0xcae   :  { %v1433_v11 = vsel %vm670_vm4, %v1299_v9, %v1421_v6  ;;  %v1456_v32 = vsel %vm714_vm3, %v1440_v13, -inf }
 0xcaf   :  { %v1436_v14 = vadd.f32 %v1433_v11, %v2629_v8 }
 0xcb1   :  { %1451 = vmax.xlane.f32.xlu1 %v1450_v16  ;;  %v1444_v36 = vsel %vm714_vm3, %v1436_v14, -inf }
 0xcb2   :  { %1445 = vmax.xlane.f32.xlu0 %v1444_v36 }
 0xcb3   :  { %v1338_v21 = vpop.f32.mrf.mxu1 }
 0xcb4   :  { %v1422_v22 = vrot.slane %v1338_v21, 4 }
 0xcb6   :  { %v1423_v25 = vsel %vm670_vm4, %v1421_v6, %v1422_v22 }
 0xcb7   :  { %v1437_v26 = vadd.f32 %v1423_v25, %v2627_v7 }
 0xcb9   :  { %v1447_v8 = vsel %vm714_vm3, %v1437_v26, -inf }
 0xcba   :  { %1448 = vmax.xlane.f32.xlu2 %v1447_v8  ;;  %1454 = vmax.xlane.f32.xlu0 %v1453_v28 }
 0xcc2   :  { %1457 = vmax.xlane.f32.xlu2 %v1456_v32 }
 0xcca   :  { %1583 = vrot.lane.b32.xlu1 %v2770_v37, %s2436_s25 }
 0xcce   :  { %1623 = vrot.lane.b32.xlu0 %v2770_v37, %s2437_s26 }
 0xcda   :  { %1581 = vrot.lane.b32.xlu2 %v2762_v18, %s2436_s25 }
 0xd1c   :  { %v1443_v59 = vpop.xlane.xlu1 %1442 }
 0xd1d   :  { %v1459_v4 = vsub.f32 %v2813_v57, %v1443_v59 }
 0xd24   :  { %v1452_v7 = vpop.xlane.xlu1 %1451 }
 0xd25   :  { %v1462_v33 = vsub.f32 %v1438_v5, %v1452_v7  ;;  %v1446_v48 = vpop.xlane.xlu0 %1445  ;;  %v1465_v5 = vmul.f32 1.442695, %v1459_v4 }
 0xd26   :  { %v1460_v23 = vsub.f32 %v1436_v14, %v1446_v48 }
 0xd27   :  { %v1471_v24 = vmul.f32 1.442695, %v1462_v33 }
 0xd28   :  { %v1467_v49 = vmul.f32 1.442695, %v1460_v23 }
 0xd29   :  { %2233 = vpow2.f32 %v1471_v24 }
 0xd2a   :  { %2235 = vpow2.f32 %v1467_v49 }
 0xd2d   :  { %v1449_v61 = vpop.xlane.xlu2 %1448  ;;  %v1455_v17 = vpop.xlane.xlu0 %1454 }
 0xd2e   :  { %v1461_v3 = vsub.f32 %v1437_v26, %v1449_v61  ;;  %v1463_v30 = vsub.f32 %v1439_v53, %v1455_v17 }
 0xd2f   :  { %v2234_v38 = vpop.eup %2233 }
 0xd30   :  { %v2236_v39 = vpop.eup %2235  ;;  %v1469_v40 = vmul.f32 1.442695, %v1461_v3  ;;  %v1473_v41 = vmul.f32 1.442695, %v1463_v30  ;;  %v1486_v35 = vsel %vm714_vm3, %v2234_v38, 0.0 }
 0xd31   :  { %1487 = vadd.xlane.f32.xlu1 %v1486_v35  ;;  %v1480_v42 = vsel %vm714_vm3, %v2236_v39, 0.0 }
 0xd32   :  { %2237 = vpow2.f32 %v1469_v40  ;;  %1481 = vadd.xlane.f32.xlu0 %v1480_v42 }
 0xd33   :  { %2239 = vpow2.f32 %v1473_v41 }
 0xd35   :  { %v1458_v43 = vpop.xlane.xlu2 %1457 }
 0xd36   :  { %v1464_v44 = vsub.f32 %v1440_v13, %v1458_v43 }
 0xd38   :  { %v2238_v45 = vpop.eup %2237  ;;  %v1475_v46 = vmul.f32 1.442695, %v1464_v44 }
 0xd39   :  { %v2240_v50 = vpop.eup %2239  ;;  %v1483_v51 = vsel %vm714_vm3, %v2238_v45, 0.0 }
 0xd3a   :  { %2241 = vpow2.f32 %v1475_v46  ;;  %1484 = vadd.xlane.f32.xlu2 %v1483_v51  ;;  %v1489_v52 = vsel %vm714_vm3, %v2240_v50, 0.0 }
 0xd3b   :  { %1490 = vadd.xlane.f32.xlu0 %v1489_v52  ;;  %2243 = vpow2.f32 %v1465_v5 }
 0xd3c   :  { %v1584_v54 = vpop.permute.xlu1 %1583 }
 0xd3d   :  { %2062 = vmatpush.msk.msra.mxu2 %vm670_vm4, %v1584_v54  ;;  %v1582_v55 = vpop.permute.xlu2 %1581 }
 0xd3f   :  { %1609 = vmatpush.msra.mxu2 %v1582_v55 }
 0xd40   :  { %v2242_v56 = vpop.eup %2241  ;;  %v1624_v58 = vpop.permute.xlu0 %1623 }
 0xd41   :  { %2065 = vmatpush.msk.msra.mxu3 %vm670_vm4, %v1624_v58  ;;  %v1492_v2 = vsel %vm714_vm3, %v2242_v56, 0.0  ;;  %v2186_v58 = vld [vmem:[#allocation10 + $0x9] ss:$0 sm:$0xff] }
 0xd42   :  { %1493 = vadd.xlane.f32.xlu2 %v1492_v2 }
 0xd4a   :  { %1549 = vrot.lane.b32.xlu1 %v2770_v37, %s2438_s27 }
 0xd4f   :  { %1621 = vrot.lane.b32.xlu0 %v2762_v18, %s2437_s26 }
 0xd52   :  { %1509 = vrot.lane.b32.xlu1 %v2770_v37, %s2439_s28  ;;  %v2244_v37 = vpop.eup %2243 }
 0xd53   :  { %v1477_v6 = vsel %vm714_vm3, %v2244_v37, 0.0 }
 0xd5a   :  { %1547 = vrot.lane.b32.xlu2 %v2762_v18, %s2438_s27  ;;  %2147 = vrot.lane.b32.xlu1 %v2146_v1, %s2440_s29 }
 0xd62   :  { %1507 = vrot.lane.b32.xlu2 %v2762_v18, %s2439_s28  ;;  %2152 = vrot.lane.b32.xlu1 %v2151_v29, %s2440_s29 }
 0xd79   :  { %1478 = vadd.xlane.f32.xlu0 %v1477_v6 }
 0xda4   :  { %v1488_v9 = vpop.xlane.xlu1 %1487 }
 0xda5   :  { %2245 = vrcp.f32 %v1488_v9  ;;  %v1482_v60 = vpop.xlane.xlu0 %1481 }
 0xdab   :  { %v2246_v62 = vpop.eup %2245 }
 0xdac   :  { %v1504_v1 = vmul.f32 %v2246_v62, %v2234_v38 }
 0xdad   :  { %v1485_v11 = vpop.xlane.xlu2 %1484 }
 0xdae   :  { %2247 = vrcp.f32 %v1485_v11  ;;  %v1491_v18 = vpop.xlane.xlu0 %1490  ;;  %2063 = vmatmul.msk.f32.vlgmr.msra.gmra.mxu2 %vm714_vm3, %v1504_v1 }
 0xdaf   :  { %2249 = vrcp.f32 %v1491_v18 }
 0xdb0   :  { %2251 = vrcp.f32 %v1482_v60 }
 0xdb4   :  { %v2248_v63 = vpop.eup %2247 }
 0xdb5   :  { %v2250_v0 = vpop.eup %2249  ;;  %v1494_v29 = vpop.xlane.xlu2 %1493  ;;  %v1503_v14 = vmul.f32 %v2248_v63, %v2238_v45 }
 0xdb6   :  { %v2252_v57 = vpop.eup %2251  ;;  %2253 = vrcp.f32 %v1494_v29  ;;  %v1505_v12 = vmul.f32 %v2250_v0, %v2240_v50 }
 0xdb7   :  { %v1502_v15 = vmul.f32 %v2252_v57, %v2236_v39  ;;  %v1545_v16 = vrot.slane %v1503_v14, 4 }
 0xdb8   :  { %2064 = vmatmul.msk.f32.gmra.mxu2 %vm714_vm3, %v1505_v12  ;;  %v1618_v27 = vrot.slane %v1505_v12, 4 }
 0xdb9   :  { %v1544_v20 = vrot.slane %v1502_v15, 4 }
 0xdbb   :  { %v1546_v25 = vsel %vm670_vm4, %v1544_v20, %v1545_v16  ;;  %v1219_v20 = vld [vmem:[#allocation8 + $0x98] sm:$0xff] }
 0xdbc   :  { %v2254_v36 = vpop.eup %2253  ;;  %v1550_v19 = vpop.permute.xlu1 %1549 }
 0xdbd   :  { %v1506_v21 = vmul.f32 %v2254_v36, %v2242_v56  ;;  %v1548_v22 = vpop.permute.xlu2 %1547  ;;  %2059 = vmatpush.msk.msra.mxu1 %vm670_vm4, %v1550_v19  ;;  %v1221_v36 = vld [vmem:[#allocation8 + $0xb8] sm:$0xff]  ;;  %v1220_v19 = vld [vmem:[#allocation8 + $0xa8] sm:$0xff] }
 0xdbf   :  { %v1619_v53 = vrot.slane %v1506_v21, 4  ;;  %1573 = vmatpush.msra.mxu1 %v1548_v22  ;;  %v1218_v21 = vld [vmem:[#allocation8 + $0x88] sm:$0xff] }
 0xdc0   :  { %2060 = vmatmul.msk.f32.vlgmr.msra.gmra.mxu1 %vm714_vm3, %v1546_v25  ;;  %v1222_v22 = vld [vmem:[#allocation8 + $0xc8] sm:$0xff]  ;;  %v2166_v25 = vpack.i.bf16 %v1220_v19, %v1221_v36 }
 0xdc1   :  { %v1622_v26 = vpop.permute.xlu0 %1621  ;;  %v1620_v8 = vsel %vm670_vm4, %v1618_v27, %v1619_v53  ;;  %1802 = vmatpush.msrb.mxu1 %v1221_v36 }
 0xdc2   :  { %1647 = vmatpush.msra.mxu3 %v1622_v26 }
 0xdc3   :  { %2066 = vmatmul.msk.f32.vlgmr.msra.gmra.mxu3 %vm714_vm3, %v1620_v8  ;;  %1803 = vmatpush.msrb.mxu1 %v1220_v19 }
 0xdc4   :  { %v1510_v28 = vpop.permute.xlu1 %1509 }
 0xdc5   :  { %2056 = vmatpush.msk.msra.mxu0 %vm670_vm4, %v1510_v28  ;;  %v1508_v31 = vpop.permute.xlu2 %1507  ;;  %1804 = vmatpush.msrb.mxu1 %v1219_v20  ;;  %v2171_v28 = vpack.i.bf16 %v1218_v21, %v1219_v20  ;;  %v2265_v20 = vld [vmem:[#allocation7] sm:$0xff] }
 0xdc7   :  { %1535 = vmatpush.msra.mxu0 %v1508_v31  ;;  %1805 = vmatpush.msrb.mxu1 %v1218_v21 }
 0xdc8   :  { %2061 = vmatmul.msk.f32.gmra.mxu1 %vm714_vm3, %v1545_v16 }
 0xdcb   :  { %2067 = vmatmul.msk.f32.gmra.mxu3 %vm714_vm3, %v1619_v53  ;;  %v1223_v53 = vld [vmem:[#allocation8 + $0xd8] sm:$0xff] }
 0xdcc   :  { %v2148_v61 = vpop.permute.xlu1 %2147  ;;  %v2161_v27 = vpack.i.bf16 %v1222_v22, %v1223_v53 }
 0xdcd   :  { %v2150_v17 = vunpack.i.h.bf16 %v2148_v61  ;;  %v2149_v3 = vunpack.i.l.bf16 %v2148_v61 }
 0xdcf   :  { %1720 = vmatpush.msrb.mxu0 %v2149_v3 }
 0xdd1   :  { %1721 = vmatpush.msrb.mxu0 %v2150_v17  ;;  %v2187_v17 = vld [vmem:[#allocation10 + $0xa] ss:$0 sm:$0xff] }
 0xdd4   :  { %v2153_v30 = vpop.permute.xlu1 %2152 }
 0xdd5   :  { %v2155_v38 = vunpack.i.h.bf16 %v2153_v30  ;;  %v2154_v39 = vunpack.i.l.bf16 %v2153_v30 }
 0xdd7   :  { %1722 = vmatpush.msrb.mxu0 %v2154_v39 }
 0xdd9   :  { %1723 = vmatpush.msrb.mxu0 %v2155_v38 }
 0xdec   :  { %v1479_v13 = vpop.xlane.xlu0 %1478 }
 0xded   :  { %2255 = vrcp.f32 %v1479_v13 }
 0xdf3   :  { %v2256_v32 = vpop.eup %2255 }
 0xdf4   :  { %v1501_v59 = vmul.f32 %v2256_v32, %v2244_v37 }
 0xdf6   :  { %2057 = vmatmul.msk.f32.vlgmr.msra.gmra.mxu0 %vm714_vm3, %v1501_v59 }
 0xdfe   :  { %2058 = vmatmul.msk.f32.gmra.mxu0 %vm714_vm3, %v1502_v15  ;;  %v1225_v15 = vld [vmem:[#allocation8 + $0xf8] sm:$0xff] }
 0xe31   :  { %v1611_v7 = vpop.f32.mrf.mxu2 }
 0xe32   :  { %1665 = vrot.lane.b32.xlu2 %v1611_v7, %s2423_s8 }
 0xe3b   :  { %v1614_v24 = vpop.f32.mrf.mxu2 }
 0xe3d   :  { %v1575_v33 = vpop.f32.mrf.mxu1 }
 0xe3e   :  { %1657 = vrot.lane.b32.xlu2 %v1575_v33, %s2420_s24 }
 0xe45   :  { %v1578_v48 = vpop.f32.mrf.mxu1 }
 0xe46   :  { %v1649_v23 = vpop.f32.mrf.mxu3  ;;  %1659 = vrot.lane.b32.xlu2 %v1578_v48, %s2420_s24  ;;  %s2443_s24 = smov 76  }
 0xe47   :  { %1673 = vrot.lane.b32.xlu1 %v1649_v23, %s2441_s30 }
 0xe4e   :  { %v1652_v49 = vpop.f32.mrf.mxu3 }
 0xe4f   :  { %1667 = vrot.lane.b32.xlu1 %v1614_v24, %s2423_s8  ;;  %1675 = vrot.lane.b32.xlu2 %v1652_v49, %s2441_s30 }
 0xe73   :  { %v1537_v35 = vpop.f32.mrf.mxu0 }
 0xe7b   :  { %v1540_v50 = vpop.f32.mrf.mxu0 }
 0xe8c   :  { %v1666_v40 = vpop.permute.xlu2 %1665 }
 0xe98   :  { %v1658_v41 = vpop.permute.xlu2 %1657 }
 0xe99   :  { %v1679_v42 = vsel %vm349_vm2, %v1537_v35, %v1658_v41 }
 0xe9a   :  { %v1681_v45 = vsel %vm116_vm0, %v1679_v42, %v1666_v40  ;;  %v2188_v40 = vld [vmem:[#allocation10 + $0xb] ss:$0 sm:$0xff] }
 0xea0   :  { %v1660_v43 = vpop.permute.xlu2 %1659 }
 0xea1   :  { %v1680_v51 = vsel %vm349_vm2, %v1540_v50, %v1660_v43 }
 0xea9   :  { %v1676_v54 = vpop.permute.xlu2 %1675 }
 0xeb9   :  { %v1674_v44 = vpop.permute.xlu1 %1673 }
 0xeba   :  { %v1683_v46 = vsel %vm957_vm5, %v1681_v45, %v1674_v44 }
 0xebb   :  { %2068 = vmatmul.msk.f32.vlgmr.msrb.gmra.mxu0 %vm484_vm1, %v1683_v46 }
 0xec1   :  { %v1668_v52 = vpop.permute.xlu1 %1667 }
 0xec2   :  { %v1682_v55 = vsel %vm116_vm0, %v1680_v51, %v1668_v52 }
 0xec3   :  { %v1684_v56 = vsel %vm957_vm5, %v1682_v55, %v1676_v54 }
 0xec4   :  { %2069 = vmatmul.msk.f32.gmra.mxu0 %vm484_vm1, %v1684_v56 }
 0xf38   :  { %v1725_v2 = vpop.f32.mrf.mxu0 }
 0xf39   :  { %v1726_v4 = vadd.f32 %v2186_v58, %v1725_v2 }
 0xf3b   :  { %v1731_v5 = vadd.f32 %v1726_v4, %v2754_v47 }
 0xf3d   :  { %v1733_v37 = vsel %vm484_vm1, %v1731_v5, 0.0 }
 0xf3e   :  { %1734 = vadd.xlane.f32.xlu0 %v1733_v37 }
 0xf41   :  { %v1728_v6 = vpop.f32.mrf.mxu0 }
 0xf42   :  { %v1729_v9 = vadd.f32 %v2186_v58, %v1728_v6 }
 0xf44   :  { %v1732_v60 = vadd.f32 %v1729_v9, %v2758_v34  ;;  %v1224_v34 = vld [vmem:[#allocation8 + $0xe8] sm:$0xff] }
 0xf45   :  { %v2156_v16 = vpack.i.bf16 %v1224_v34, %v1225_v15 }
 0xf46   :  { %v1736_v62 = vsel %vm1011_vm6, %v1732_v60, 0.0 }
 0xf47   :  { %1737 = vadd.xlane.f32.xlu1 %v1736_v62  ;;  %v2189_v62 = vld [vmem:[#allocation10 + $0xc] ss:$0 sm:$0xff] }
 0xf60   :  { %2167 = vrot.lane.b32.xlu1 %v2166_v25, %s2439_s28 }
 0xf68   :  { %1929 = vrot.lane.b32.xlu1 %v2265_v20, %s2443_s24 }
 0xfb1   :  { %v1735_v1 = vpop.xlane.xlu0 %1734 }
 0xfb2   :  { %v1739_v11 = vmul.f32 %v1735_v1, %v2714_v10 }
 0xfb4   :  { %v1741_v18 = vsub.f32 %v1731_v5, %v1739_v11 }
 0xfb6   :  { %v1743_v63 = vmul.f32 %v1741_v18, %v1741_v18 }
 0xfb8   :  { %v1745_v0 = vsel %vm484_vm1, %v1743_v63, 0.0 }
 0xfb9   :  { %1746 = vadd.xlane.f32.xlu2 %v1745_v0 }
 0xfba   :  { %v1738_v29 = vpop.xlane.xlu1 %1737 }
 0xfbb   :  { %v1740_v47 = vmul.f32 %v1738_v29, %v2714_v10 }
 0xfbd   :  { %v1742_v57 = vsub.f32 %v1732_v60, %v1740_v47  ;;  %v2190_v47 = vld [vmem:[#allocation10 + $0xd] ss:$0 sm:$0xff] }
 0xfbf   :  { %v1744_v12 = vmul.f32 %v1742_v57, %v1742_v57 }
 0xfc1   :  { %v1748_v14 = vsel %vm1011_vm6, %v1744_v12, 0.0 }
 0xfc2   :  { %1749 = vadd.xlane.f32.xlu0 %v1748_v14 }
 0xfd2   :  { %v2168_v4 = vpop.permute.xlu1 %2167 }
 0xfd3   :  { %v2169_v5 = vunpack.i.l.bf16 %v2168_v4  ;;  %v2170_v37 = vunpack.i.h.bf16 %v2168_v4  ;;  %v110_v4 = vld [vmem:[#allocation7 + $0x18] sm:$0xff] }
 0xfd6   :  { %2157 = vrot.lane.b32.xlu0 %v2156_v16, %s2439_s28 }
 0xfde   :  { %2162 = vrot.lane.b32.xlu0 %v2161_v27, %s2439_s28 }
 0xfe6   :  { %2172 = vrot.lane.b32.xlu0 %v2171_v28, %s2439_s28 }
0x102c   :  { %v1747_v26 = vpop.xlane.xlu2 %1746 }
0x102d   :  { %v1751_v8 = vmul.f32 %v1747_v26, %v2714_v10 }
0x102f   :  { %v1753_v31 = vadd.f32 1e-05, %v1751_v8 }
0x1031   :  { %2257 = vrsqrt.f32 %v1753_v31  ;;  %vm1761_vm2 = vweird.f32 %v1753_v31 }
0x1035   :  { %v1750_v13 = vpop.xlane.xlu0 %1749 }
0x1036   :  { %v1752_v32 = vmul.f32 %v1750_v13, %v2714_v10 }
0x1037   :  { %v2258_v59 = vpop.eup %2257 }
0x1038   :  { %v1756_v7 = vmul.f32 %v2258_v59, %v1753_v31  ;;  %v1754_v33 = vadd.f32 1e-05, %v1752_v32  ;;  %vm1762_vm0 = vweird.f32 %v2258_v59 }
0x1039   :  { %vm1763_vm5 = vmor %vm1761_vm2, %vm1762_vm0 }
0x103a   :  { %v1757_v48 = vmul.f32 %v2258_v59, %v1756_v7  ;;  %2259 = vrsqrt.f32 %v1754_v33  ;;  %vm1771_vm13 = vweird.f32 %v1754_v33 }
0x103c   :  { %v1758_v23 = vmul.f32 0.5, %v1757_v48 }
0x103e   :  { %v1759_v24 = vsub.f32 1.5, %v1758_v23 }
0x1040   :  { %v2260_v49 = vpop.eup %2259  ;;  %v1760_v61 = vmul.f32 %v2258_v59, %v1759_v24 }
0x1041   :  { %v1766_v3 = vmul.f32 %v2260_v49, %v1754_v33  ;;  %vm1772_vm12 = vweird.f32 %v2260_v49 }
0x1042   :  { %v1764_v30 = vsel %vm1763_vm5, %v2258_v59, %v1760_v61  ;;  %vm1773_vm15 = vmor %vm1771_vm13, %vm1772_vm12 }
0x1043   :  { %v1775_v38 = vmul.f32 %v1764_v30, %v1741_v18  ;;  %v1767_v39 = vmul.f32 %v2260_v49, %v1766_v3 }
0x1045   :  { %v1778_v41 = vmul.f32 %v2187_v17, %v1775_v38  ;;  %v1768_v35 = vmul.f32 0.5, %v1767_v39 }
0x1047   :  { %v1769_v42 = vsub.f32 1.5, %v1768_v35  ;;  %v1781_v43 = vadd.f32 %v2188_v40, %v1778_v41 }
0x1048   :  { %v2158_v52 = vpop.permute.xlu0 %2157 }
0x1049   :  { %v1770_v44 = vmul.f32 %v2260_v49, %v1769_v42  ;;  %2070 = vmatmul.msk.f32.vlgmr.msrb.gmra.mxu1 %vm484_vm1, %v1781_v43  ;;  %v2160_v54 = vunpack.i.h.bf16 %v2158_v52  ;;  %v2159_v55 = vunpack.i.l.bf16 %v2158_v52 }
0x104b   :  { %v1774_v45 = vsel %vm1773_vm15, %v2260_v49, %v1770_v44  ;;  %1862 = vmatpush.msrb.mxu2 %v2159_v55 }
0x104c   :  { %v1776_v46 = vmul.f32 %v1774_v45, %v1742_v57 }
0x104d   :  { %1863 = vmatpush.msrb.mxu2 %v2160_v54 }
0x104e   :  { %v1779_v50 = vmul.f32 %v2187_v17, %v1776_v46 }
0x1050   :  { %v1782_v51 = vadd.f32 %v2188_v40, %v1779_v50  ;;  %v2163_v56 = vpop.permute.xlu0 %2162  ;;  %v2191_v40 = vld [vmem:[#allocation10 + $0xe] ss:$0 sm:$0xff] }
0x1051   :  { %v2165_v58 = vunpack.i.h.bf16 %v2163_v56  ;;  %v2164_v2 = vunpack.i.l.bf16 %v2163_v56  ;;  %v1930_v56 = vpop.permute.xlu1 %1929 }
0x1052   :  { %2071 = vmatmul.msk.f32.gmra.mxu1 %vm484_vm1, %v1782_v51 }
0x1053   :  { %1864 = vmatpush.msrb.mxu2 %v2164_v2  ;;  %v111_v2 = vld [vmem:[#allocation7 + $0x28] sm:$0xff] }
0x1055   :  { %1865 = vmatpush.msrb.mxu2 %v2165_v58  ;;  %v112_v58 = vld [vmem:[#allocation7 + $0x38] sm:$0xff] }
0x1057   :  { %1866 = vmatpush.msrb.mxu2 %v2169_v5  ;;  %v109_v5 = vld [vmem:[#allocation7 + $0x8] sm:$0xff] }
0x1058   :  { %v2173_v6 = vpop.permute.xlu0 %2172 }
0x1059   :  { %v2175_v9 = vunpack.i.h.bf16 %v2173_v6  ;;  %v2174_v60 = vunpack.i.l.bf16 %v2173_v6  ;;  %1867 = vmatpush.msrb.mxu2 %v2170_v37 }
0x105b   :  { %1868 = vmatpush.msrb.mxu2 %v2174_v60 }
0x105d   :  { %1869 = vmatpush.msrb.mxu2 %v2175_v9  ;;  %v113_v9 = vld [vmem:[#allocation7 + $0x48] ss:$0 sm:$0xff] }
0x10c6   :  { %v1807_v1 = vpop.f32.mrf.mxu1 }
0x10c7   :  { %v1808_v11 = vadd.f32 %v2189_v62, %v1807_v1 }
0x10c9   :  { %v1813_v18 = vmax.f32 %v1808_v11, 0.0 }
0x10cb   :  { %2072 = vmatmul.msk.f32.vlgmr.msrb.gmra.mxu2 %vm1131_vm14, %v1813_v18 }
0x10cf   :  { %v1810_v63 = vpop.f32.mrf.mxu1 }
0x10d0   :  { %v1811_v0 = vadd.f32 %v2189_v62, %v1810_v63 }
0x10d2   :  { %v1814_v29 = vmax.f32 %v1811_v0, 0.0 }
0x10d4   :  { %2073 = vmatmul.msk.f32.gmra.mxu2 %vm1131_vm14, %v1814_v29 }
0x114e   :  { %v1871_v57 = vpop.f32.mrf.mxu2 }
0x114f   :  { %v1872_v12 = vadd.f32 %v2190_v47, %v1871_v57 }
0x1151   :  { %v1877_v14 = vadd.f32 %v1872_v12, %v1781_v43  ;;  %v2192_v43 = vld [vmem:[#allocation10 + $0xf] ss:$0 sm:$0xff] }
0x1153   :  { %v1879_v34 = vsel %vm484_vm1, %v1877_v14, 0.0 }
0x1154   :  { %1880 = vadd.xlane.f32.xlu0 %v1879_v34 }
0x1157   :  { %v1874_v15 = vpop.f32.mrf.mxu2 }
0x1158   :  { %v1875_v16 = vadd.f32 %v2190_v47, %v1874_v15 }
0x115a   :  { %v1878_v36 = vadd.f32 %v1875_v16, %v1782_v51 }
0x115c   :  { %v1882_v19 = vsel %vm1011_vm6, %v1878_v36, 0.0 }
0x115d   :  { %1883 = vadd.xlane.f32.xlu2 %v1882_v19 }
0x11c7   :  { %v1881_v21 = vpop.xlane.xlu0 %1880 }
0x11c8   :  { %v1885_v27 = vmul.f32 %v1881_v21, %v2714_v10 }
0x11ca   :  { %v1887_v8 = vsub.f32 %v1877_v14, %v1885_v27 }
0x11cc   :  { %v1889_v31 = vmul.f32 %v1887_v8, %v1887_v8 }
0x11ce   :  { %v1891_v13 = vsel %vm484_vm1, %v1889_v31, 0.0 }
0x11d0   :  { %v1884_v22 = vpop.xlane.xlu2 %1883 }
0x11d1   :  { %v1886_v53 = vmul.f32 %v1884_v22, %v2714_v10 }
0x11d3   :  { %v1888_v25 = vsub.f32 %v1878_v36, %v1886_v53 }
0x11d5   :  { %v1890_v26 = vmul.f32 %v1888_v25, %v1888_v25 }
0x11d7   :  { %v1894_v28 = vsel %vm1011_vm6, %v1890_v26, 0.0 }
0x11d8   :  { %1895 = vadd.xlane.f32.xlu2 %v1894_v28 }
0x11e0   :  { %1892 = vadd.xlane.f32.xlu2 %v1891_v13 }
0x124b   :  { %v1896_v32 = vpop.xlane.xlu2 %1895 }
0x124c   :  { %v1898_v59 = vmul.f32 %v1896_v32, %v2714_v10 }
0x124e   :  { %v1900_v7 = vadd.f32 1e-05, %v1898_v59 }
0x1250   :  { %2261 = vrsqrt.f32 %v1900_v7  ;;  %vm1917_vm14 = vweird.f32 %v1900_v7 }
0x1253   :  { %v1893_v33 = vpop.xlane.xlu2 %1892 }
0x1254   :  { %v1897_v48 = vmul.f32 %v1893_v33, %v2714_v10 }
0x1256   :  { %v2262_v23 = vpop.eup %2261  ;;  %v1899_v24 = vadd.f32 1e-05, %v1897_v48 }
0x1257   :  { %v1912_v49 = vmul.f32 %v2262_v23, %v1900_v7  ;;  %vm1918_vm6 = vweird.f32 %v2262_v23 }
0x1258   :  { %2263 = vrsqrt.f32 %v1899_v24  ;;  %vm1919_vm7 = vmor %vm1917_vm14, %vm1918_vm6  ;;  %vm1907_vm9 = vweird.f32 %v1899_v24 }
0x1259   :  { %v1913_v61 = vmul.f32 %v2262_v23, %v1912_v49 }
0x125b   :  { %v1914_v17 = vmul.f32 0.5, %v1913_v61 }
0x125d   :  { %v1915_v3 = vsub.f32 1.5, %v1914_v17 }
0x125e   :  { %v2264_v30 = vpop.eup %2263 }
0x125f   :  { %v1916_v38 = vmul.f32 %v2262_v23, %v1915_v3  ;;  %v1902_v39 = vmul.f32 %v2264_v30, %v1899_v24  ;;  %vm1908_vm8 = vweird.f32 %v2264_v30 }
0x1260   :  { %vm1909_vm10 = vmor %vm1907_vm9, %vm1908_vm8 }
0x1261   :  { %v1920_v41 = vsel %vm1919_vm7, %v2262_v23, %v1916_v38  ;;  %v1903_v35 = vmul.f32 %v2264_v30, %v1902_v39 }
0x1262   :  { %v1922_v42 = vmul.f32 %v1920_v41, %v1888_v25 }
0x1263   :  { %v1904_v44 = vmul.f32 0.5, %v1903_v35 }
0x1264   :  { %v1925_v10 = vmul.f32 %v2191_v40, %v1922_v42 }
0x1265   :  { %v1905_v45 = vsub.f32 1.5, %v1904_v44 }
0x1266   :  { %v1928_v46 = vadd.f32 %v2192_v43, %v1925_v10 }
0x1267   :  { %v1906_v50 = vmul.f32 %v2264_v30, %v1905_v45 }
0x1268   :  { %2074 = vmatpush.msk.msrb.mxu3 %vm670_vm4, %v1928_v46 }
0x1269   :  { %v1910_v51 = vsel %vm1909_vm10, %v2264_v30, %v1906_v50 }
0x126a   :  { %v1921_v52 = vmul.f32 %v1910_v51, %v1887_v8 }
0x126c   :  { %v1924_v54 = vmul.f32 %v2191_v40, %v1921_v52 }
0x126e   :  { %v1927_v55 = vadd.f32 %v2192_v43, %v1924_v54 }
0x1270   :  { %1951 = vmatpush.msrb.mxu3 %v1927_v55 }
0x1271   :  { %2075 = vmatmul.msk.f32.vlgmr.msrb.gmra.mxu3 %vm714_vm3, %v1930_v56 }
0x1272   :  { %1972 = vmatpush.msra.mxu3 %v112_v58 }
0x1274   :  { %1973 = vmatpush.msra.mxu3 %v111_v2 }
0x1276   :  { %1974 = vmatpush.msra.mxu3 %v110_v4 }
0x1278   :  { %1975 = vmatpush.msra.mxu3 %v109_v5 }
0x12f4   :  { %v1953_v37 = vpop.f32.mrf.mxu3 }
0x12f5   :  { %v1956_v6 = vmul.f32 0.16666667, %v1953_v37 }
0x12f7   :  { %2076 = vmatmul.msk.f32.vlgmr.msra.gmra.mxu3 %vm484_vm1, %v1956_v6 }
0x137a   :  { %v1977_v60 = vpop.f32.mrf.mxu3 }
0x137b   :  { %v1978_v62 = vadd.f32 %v1977_v60, %v113_v9 }
0x137d   :  { %1980 = vst [vmem:[#allocation11] sm:$0xff] %v1978_v62 }
0x137e   :  { %1991 = dma.vmem_to_hbm [thread:$0]  %s1987_s1, 128, %s1989_s9, [#allocation4]  }
0x137f   :  { %2416 = dma.done.wait [#allocation4], 128  }
0x1380   :  { %2417 = vsyncadd [#allocation4], 4294967168 }
0x1381   :  { %1996 = vsyncpa [#allocation3], 1 }
0x1382   :  { %1997 = vsyncpa [#allocation6], 1 }
0x1383   :  { %1998 = vsyncpa [#allocation9], 1 }
0x1384   :  { %1999 = vsyncpa [#allocation4], 1 }

</bundles_post_ra>
